<compile_context>
chip_gen: v7x
topology: tpu7x:2x2x1
jax: 0.10.0
libtpu: 0.0.40
codegen_flags: <defaults>
</compile_context>

<pallas_src>
import functools

import jax
import jax.numpy as jnp
from jax.experimental import pallas as pl
from jax.experimental.pallas import tpu as pltpu


# --------------------------------- kernel ------------------------------------

def decoder_layer_kernel(
    xq_ref, q0_ref, k0t_ref, v0_ref, k1t_ref, v1_ref,
    tgt_bias_ref, src_bias_ref, vecs_ref, b1_ref,
    wq1_ref, wo0_ref, wo1_ref, w1_ref, w2_ref,
    o_ref, ctx_ref, *, h, eps,
):
    f32 = jnp.float32
    bf16 = jnp.bfloat16

    x = xq_ref[0].astype(f32)                   # (tq, D)   residual stream tile
    q0 = q0_ref[0]                              # (tq, D)   bf16, scale folded in
    k0t = k0t_ref[0]                            # (D, S)    bf16 self-attn K^T
    v0 = v0_ref[0]                              # (S, D)    bf16 self-attn V
    k1t = k1t_ref[0]                            # (D, S_m)  bf16 cross-attn K^T
    v1 = v1_ref[0]                              # (S_m, D)  bf16 cross-attn V
    tgt_bias = tgt_bias_ref[...].astype(f32)    # (tq, S)   additive bias (0/-1e9)
    src_bias = src_bias_ref[...].astype(f32)    # (1, S_m)

    vecs = vecs_ref[...]                        # (8, D) packed per-feature vectors
    ln1a, ln1b = vecs[0:1], vecs[1:2]
    ln2a, ln2b = vecs[2:3], vecs[3:4]
    bq1 = vecs[4:5]                             # cross-attn query bias (scaled)
    bo0, bo1 = vecs[5:6], vecs[6:7]
    b2 = vecs[7:8]
    b1 = b1_ref[...]                            # (1, D_FF)

    D = x.shape[-1]
    dk = D // h

    def layernorm(v, a, b):
        # torch: mean over last dim, unbiased std (N-1), divide by (std + eps)
        d = v.shape[-1]
        mean = jnp.mean(v, axis=-1, keepdims=True)
        var = jnp.sum((v - mean) ** 2, axis=-1, keepdims=True) * (1.0 / (d - 1))
        # exact reciprocal: LN feeds the residual stream; EUP is not the bottleneck
        return a * (v - mean) / (jnp.sqrt(var) + eps) + b

    def attend(q_bf, kt, v, bias, wo_ref, bo):
        # Per-head attention; contexts written into column slices of the (tq, D)
        # bf16 scratch, then ONE full-width output projection (head-merged).
        for i in range(h):                      # h small & static -> unrolled
            sl = slice(i * dk, (i + 1) * dk)
            s = jnp.dot(q_bf[:, sl], kt[sl, :], preferred_element_type=f32) + bias
            s = s - jnp.max(s, axis=-1, keepdims=True)
            p = jnp.exp(s)
            p = p * pl.reciprocal(jnp.sum(p, axis=-1, keepdims=True), approx=True)
            ctx_ref[:, sl] = jnp.dot(p.astype(bf16), v[:, sl],
                                     preferred_element_type=f32).astype(bf16)
        return jnp.dot(ctx_ref[...], wo_ref[...], preferred_element_type=f32) + bo

    # sublayer 0: self-attention (LN0 + Q/K/V projections precomputed in wrapper)
    x = x + attend(q0, k0t, v0, tgt_bias, wo0_ref, bo0)

    # sublayer 1: cross-attention over encoder memory (K/V precomputed in wrapper)
    nx = layernorm(x, ln1a, ln1b).astype(bf16)
    q1 = (jnp.dot(nx, wq1_ref[...], preferred_element_type=f32) + bq1).astype(bf16)
    x = x + attend(q1, k1t, v1, src_bias, wo1_ref, bo1)

    # sublayer 2: position-wise feed-forward
    nx = layernorm(x, ln2a, ln2b).astype(bf16)
    hid = jnp.maximum(jnp.dot(nx, w1_ref[...], preferred_element_type=f32) + b1, 0.0)
    x = x + jnp.dot(hid.astype(bf16), w2_ref[...], preferred_element_type=f32) + b2

    o_ref[0] = x.astype(o_ref.dtype)


# --------------------------------- wrapper -----------------------------------

def _default_vmem_limit_bytes():
    # ~3/4 of physical VMEM per TensorCore, capped at 100 MiB:
    #   v5e/v6e (128 MiB) -> 96 MiB, v7x (64 MiB) -> 48 MiB.
    try:
        cap = pltpu.get_tpu_info().vmem_capacity_bytes
        return min(int(cap * 3 // 4), 100 * 1024 * 1024)
    except Exception:
        return None  # fall back to the compiler default


def decoder_layer(x, memory, src_mask, tgt_mask, params, *, h, eps=1e-6, tq=None,
                  vmem_limit_bytes=None):
    B, S, D = x.shape
    _, S_m, _ = memory.shape
    (ln0a, ln0b, wq0, bq0, wk0, bk0, wv0, bv0, wo0, bo0,
     ln1a, ln1b, wq1, bq1, wk1, bk1, wv1, bv1, wo1, bo1,
     ln2a, ln2b, w1, b1, w2, b2) = params
    D_FF = w1.shape[1]
    assert D % h == 0
    dk = D // h

    if tq is None:
        tq = min(S, 256)              # real runs: keep tq >= 128 where S allows
    assert S % tq == 0, "sequence length must be divisible by the query tile"
    assert tq % 8 == 0 or tq == S

    f32, bf16 = jnp.float32, jnp.bfloat16
    scale = 1.0 / float(dk) ** 0.5

    # ---- hoisted prologue (plain XLA): LN0, self-attn Q/K/V, cross-attn K/V ----
    def ln(v, a, b):
        mean = v.mean(-1, keepdims=True)
        var = ((v - mean) ** 2).sum(-1, keepdims=True) / (v.shape[-1] - 1)
        return a * (v - mean) / (jnp.sqrt(var) + eps) + b

    xf = x.astype(f32)
    nx0 = ln(xf, ln0a, ln0b)
    q0 = (nx0 @ (wq0 * scale) + bq0 * scale).astype(bf16)          # (B, S, D)
    k0t = jnp.swapaxes(nx0 @ wk0 + bk0, 1, 2).astype(bf16)         # (B, D, S)
    v0 = (nx0 @ wv0 + bv0).astype(bf16)                            # (B, S, D)
    memf = memory.astype(f32)
    k1t = jnp.swapaxes(memf @ wk1 + bk1, 1, 2).astype(bf16)        # (B, D, S_m)
    v1 = (memf @ wv1 + bv1).astype(bf16)                           # (B, S_m, D)

    # additive attention biases precomputed (no compare/select in-kernel), bf16
    neg = jnp.float32(-1e9)
    tgt_bias = jnp.where(tgt_mask == 0, neg, jnp.float32(0.0)).astype(bf16)  # (S, S)
    src_bias = jnp.where(src_mask == 0, neg, jnp.float32(0.0)).astype(bf16)  # (1, S_m)

    # pack all remaining D-wide vectors into one (8, D) slab -> single DMA
    def row(v):
        return jnp.reshape(v, (1, D)).astype(f32)
    vecs = jnp.concatenate([
        row(ln1a), row(ln1b), row(ln2a), row(ln2b),
        row(bq1 * scale), row(bo0), row(bo1), row(b2)], axis=0)    # (8, D)
    b1v = jnp.reshape(b1, (1, D_FF)).astype(f32)

    # matmul weights streamed in bf16 (f32 accumulation inside the kernel)
    weights = [(wq1 * scale).astype(bf16), wo0.astype(bf16), wo1.astype(bf16),
               w1.astype(bf16), w2.astype(bf16)]

    def const_spec(shape):
        nd = len(shape)
        return pl.BlockSpec(shape, lambda b, q, _n=nd: (0,) * _n)

    def batch_spec(shape):
        nz = len(shape)
        return pl.BlockSpec((1,) + shape, lambda b, q, _n=nz: (b,) + (0,) * _n)

    in_specs = [
        pl.BlockSpec((1, tq, D), lambda b, q: (b, q, 0)),    # x residual tile
        pl.BlockSpec((1, tq, D), lambda b, q: (b, q, 0)),    # q0 tile (bf16)
        batch_spec((D, S)),                                  # k0t
        batch_spec((S, D)),                                  # v0
        batch_spec((D, S_m)),                                # k1t
        batch_spec((S_m, D)),                                # v1
        pl.BlockSpec((tq, S), lambda b, q: (q, 0)),          # tgt additive bias rows
        const_spec((1, S_m)),                                # src additive bias
        const_spec(tuple(vecs.shape)),                       # packed vector slab
        const_spec(tuple(b1v.shape)),                        # FFN hidden bias
    ] + [const_spec(tuple(w.shape)) for w in weights]

    if vmem_limit_bytes is None:
        vmem_limit_bytes = _default_vmem_limit_bytes()
    cp_kwargs = dict(dimension_semantics=("parallel", "parallel"))
    if vmem_limit_bytes is not None:
        cp_kwargs["vmem_limit_bytes"] = int(vmem_limit_bytes)

    kernel = functools.partial(decoder_layer_kernel, h=h, eps=eps)
    return pl.pallas_call(
        kernel,
        out_shape=jax.ShapeDtypeStruct((B, S, D), x.dtype),
        grid_spec=pltpu.PrefetchScalarGridSpec(
            num_scalar_prefetch=0,
            grid=(B, S // tq),
            in_specs=in_specs,
            out_specs=pl.BlockSpec((1, tq, D), lambda b, q: (b, q, 0)),
            scratch_shapes=[pltpu.VMEM((tq, D), jnp.bfloat16)],   # head-merged ctx
        ),
        compiler_params=pltpu.CompilerParams(**cp_kwargs),
    )(x, q0, k0t, v0, k1t, v1, tgt_bias, src_bias, vecs, b1v, *weights)


# ---------------------------- pure-JAX reference ------------------------------

def ref_decoder_layer(x, memory, src_mask, tgt_mask, params, *, h, eps=1e-6):
    (ln0a, ln0b, wq0, bq0, wk0, bk0, wv0, bv0, wo0, bo0,
     ln1a, ln1b, wq1, bq1, wk1, bk1, wv1, bv1, wo1, bo1,
     ln2a, ln2b, w1, b1, w2, b2) = params

    def ln(x, a, b):
        d = x.shape[-1]
        mean = x.mean(-1, keepdims=True)
        var = ((x - mean) ** 2).sum(-1, keepdims=True) / (d - 1)
        return a * (x - mean) / (jnp.sqrt(var) + eps) + b

    def mha(q, k, v, mask, wq, bq, wk, bk, wv, bv, wo, bo):
        B, Sq, D = q.shape
        Sk = k.shape[1]
        dk = D // h
        Q = (q @ wq + bq).reshape(B, Sq, h, dk).transpose(0, 2, 1, 3)
        K = (k @ wk + bk).reshape(B, Sk, h, dk).transpose(0, 2, 1, 3)
        V = (v @ wv + bv).reshape(B, Sk, h, dk).transpose(0, 2, 1, 3)
        s = (Q @ K.transpose(0, 1, 3, 2)) / jnp.sqrt(jnp.float32(dk))
        s = jnp.where(mask == 0, -1e9, s)
        p = jax.nn.softmax(s, axis=-1)
        o = (p @ V).transpose(0, 2, 1, 3).reshape(B, Sq, D)
        return o @ wo + bo

    nx = ln(x, ln0a, ln0b)
    x = x + mha(nx, nx, nx, tgt_mask, wq0, bq0, wk0, bk0, wv0, bv0, wo0, bo0)
    nx = ln(x, ln1a, ln1b)
    x = x + mha(nx, memory, memory, src_mask,
                wq1, bq1, wk1, bk1, wv1, bv1, wo1, bo1)
    nx = ln(x, ln2a, ln2b)
    return x + jnp.maximum(nx @ w1 + b1, 0.0) @ w2 + b2


# ----------------------------------- main ------------------------------------

if __name__ == "__main__":
    B, S, S_m, D, H, D_FF = 2, 16, 16, 128, 4, 256
    EPS = 1e-6

    key = jax.random.PRNGKey(0)
    ks = jax.random.split(key, 16)

    def lin(kw, out_dim, in_dim, scale=0.05):
        # stored as [in, out] (pre-transposed torch weight), bias as [1, out]
        w = scale * jax.random.normal(kw, (in_dim, out_dim), jnp.float32)
        b = scale * jax.random.normal(jax.random.fold_in(kw, 1), (1, out_dim), jnp.float32)
        return w, b

    def ln_params(kw):
        a = 1.0 + 0.1 * jax.random.normal(kw, (1, D), jnp.float32)
        b = 0.1 * jax.random.normal(jax.random.fold_in(kw, 1), (1, D), jnp.float32)
        return a, b

    ln0a, ln0b = ln_params(ks[12])
    ln1a, ln1b = ln_params(ks[13])
    ln2a, ln2b = ln_params(ks[14])

    wq0, bq0 = lin(ks[0], D, D); wk0, bk0 = lin(ks[1], D, D)
    wv0, bv0 = lin(ks[2], D, D); wo0, bo0 = lin(ks[3], D, D)
    wq1, bq1 = lin(ks[4], D, D); wk1, bk1 = lin(ks[5], D, D)
    wv1, bv1 = lin(ks[6], D, D); wo1, bo1 = lin(ks[7], D, D)
    w1, b1 = lin(ks[8], D_FF, D)
    w2, b2 = lin(ks[9], D, D_FF)

    params = (ln0a, ln0b, wq0, bq0, wk0, bk0, wv0, bv0, wo0, bo0,
              ln1a, ln1b, wq1, bq1, wk1, bk1, wv1, bv1, wo1, bo1,
              ln2a, ln2b, w1, b1, w2, b2)

    x = jax.random.normal(ks[10], (B, S, D), jnp.float32)
    memory = jax.random.normal(ks[11], (B, S_m, D), jnp.float32)
    # causal target mask (S, S), all-ones source mask (1, S_m)  (nonzero == keep)
    tgt_mask = jnp.tril(jnp.ones((S, S), jnp.float32))
    src_mask = jnp.ones((1, S_m), jnp.float32)

    out = decoder_layer(x, memory, src_mask, tgt_mask, params, h=H, eps=EPS)
    out = jax.block_until_ready(out)

    ref = ref_decoder_layer(x, memory, src_mask, tgt_mask, params, h=H, eps=EPS)
    assert out.shape == (B, S, D)
    # bf16 matmul operands + approx softmax reciprocal vs f32 reference
    assert jnp.allclose(out, ref, atol=2e-2, rtol=2e-2), "mismatch vs JAX reference"

    print("KERNEL_OK")
</pallas_src>

<mosaic_0001>
module attributes {stable_mosaic.version = 11 : i64} {
  func.func @decoder_layer_kernel(%arg0: i32, %arg1: i32, %arg2: memref<1x16x128xf32, #tpu.memory_space<vmem>>, %arg3: memref<1x16x128xbf16, #tpu.memory_space<vmem>>, %arg4: memref<1x128x16xbf16, #tpu.memory_space<vmem>>, %arg5: memref<1x16x128xbf16, #tpu.memory_space<vmem>>, %arg6: memref<1x128x16xbf16, #tpu.memory_space<vmem>>, %arg7: memref<1x16x128xbf16, #tpu.memory_space<vmem>>, %arg8: memref<16x16xbf16, #tpu.memory_space<vmem>>, %arg9: memref<1x16xbf16, #tpu.memory_space<vmem>>, %arg10: memref<8x128xf32, #tpu.memory_space<vmem>>, %arg11: memref<1x256xf32, #tpu.memory_space<vmem>>, %arg12: memref<128x128xbf16, #tpu.memory_space<vmem>>, %arg13: memref<128x128xbf16, #tpu.memory_space<vmem>>, %arg14: memref<128x128xbf16, #tpu.memory_space<vmem>>, %arg15: memref<128x256xbf16, #tpu.memory_space<vmem>>, %arg16: memref<256x128xbf16, #tpu.memory_space<vmem>>, %arg17: memref<1x16x128xf32, #tpu.memory_space<vmem>>, %arg18: memref<16x128xbf16, #tpu.memory_space<vmem>>) attributes {dimension_semantics = [#tpu.dimension_semantics<parallel>, #tpu.dimension_semantics<parallel>], iteration_bounds = array<i64: 2, 1>, scalar_prefetch = 0 : i64, scratch_operands = 1 : i64, tpu.core_type = #tpu.core_type<tc>, window_params = [{transform_indices = @transform_0, window_bounds = array<i64: 1, 16, 128>}, {transform_indices = @transform_1, window_bounds = array<i64: 1, 16, 128>}, {transform_indices = @transform_2, window_bounds = array<i64: 1, 128, 16>}, {transform_indices = @transform_3, window_bounds = array<i64: 1, 16, 128>}, {transform_indices = @transform_4, window_bounds = array<i64: 1, 128, 16>}, {transform_indices = @transform_5, window_bounds = array<i64: 1, 16, 128>}, {transform_indices = @transform_6, window_bounds = array<i64: 16, 16>}, {pipeline_mode = #tpu.pipeline_mode<synchronous>, transform_indices = @transform_7, window_bounds = array<i64: 1, 16>}, {pipeline_mode = #tpu.pipeline_mode<synchronous>, transform_indices = @transform_8, window_bounds = array<i64: 8, 128>}, {pipeline_mode = #tpu.pipeline_mode<synchronous>, transform_indices = @transform_9, window_bounds = array<i64: 1, 256>}, {pipeline_mode = #tpu.pipeline_mode<synchronous>, transform_indices = @transform_10, window_bounds = array<i64: 128, 128>}, {pipeline_mode = #tpu.pipeline_mode<synchronous>, transform_indices = @transform_11, window_bounds = array<i64: 128, 128>}, {pipeline_mode = #tpu.pipeline_mode<synchronous>, transform_indices = @transform_12, window_bounds = array<i64: 128, 128>}, {pipeline_mode = #tpu.pipeline_mode<synchronous>, transform_indices = @transform_13, window_bounds = array<i64: 128, 256>}, {pipeline_mode = #tpu.pipeline_mode<synchronous>, transform_indices = @transform_14, window_bounds = array<i64: 256, 128>}, {transform_indices = @transform_15, window_bounds = array<i64: 1, 16, 128>}]} {
    %c0 = arith.constant 0 : index
    %c0_0 = arith.constant 0 : index
    %c0_1 = arith.constant 0 : index
    %0 = vector.load %arg2[%c0, %c0_0, %c0_1] : memref<1x16x128xf32, #tpu.memory_space<vmem>>, vector<1x16x128xf32>
    %1 = vector.shape_cast %0 : vector<1x16x128xf32> to vector<16x128xf32>
    %c0_2 = arith.constant 0 : index
    %c0_3 = arith.constant 0 : index
    %c0_4 = arith.constant 0 : index
    %2 = vector.load %arg3[%c0_2, %c0_3, %c0_4] : memref<1x16x128xbf16, #tpu.memory_space<vmem>>, vector<1x16x128xbf16>
    %3 = vector.shape_cast %2 : vector<1x16x128xbf16> to vector<16x128xbf16>
    %c0_5 = arith.constant 0 : index
    %c0_6 = arith.constant 0 : index
    %c0_7 = arith.constant 0 : index
    %4 = vector.load %arg4[%c0_5, %c0_6, %c0_7] : memref<1x128x16xbf16, #tpu.memory_space<vmem>>, vector<1x128x16xbf16>
    %5 = vector.shape_cast %4 : vector<1x128x16xbf16> to vector<128x16xbf16>
    %c0_8 = arith.constant 0 : index
    %c0_9 = arith.constant 0 : index
    %c0_10 = arith.constant 0 : index
    %6 = vector.load %arg5[%c0_8, %c0_9, %c0_10] : memref<1x16x128xbf16, #tpu.memory_space<vmem>>, vector<1x16x128xbf16>
    %7 = vector.shape_cast %6 : vector<1x16x128xbf16> to vector<16x128xbf16>
    %c0_11 = arith.constant 0 : index
    %c0_12 = arith.constant 0 : index
    %c0_13 = arith.constant 0 : index
    %8 = vector.load %arg6[%c0_11, %c0_12, %c0_13] : memref<1x128x16xbf16, #tpu.memory_space<vmem>>, vector<1x128x16xbf16>
    %9 = vector.shape_cast %8 : vector<1x128x16xbf16> to vector<128x16xbf16>
    %c0_14 = arith.constant 0 : index
    %c0_15 = arith.constant 0 : index
    %c0_16 = arith.constant 0 : index
    %10 = vector.load %arg7[%c0_14, %c0_15, %c0_16] : memref<1x16x128xbf16, #tpu.memory_space<vmem>>, vector<1x16x128xbf16>
    %11 = vector.shape_cast %10 : vector<1x16x128xbf16> to vector<16x128xbf16>
    %c0_17 = arith.constant 0 : index
    %c0_18 = arith.constant 0 : index
    %12 = vector.load %arg8[%c0_17, %c0_18] : memref<16x16xbf16, #tpu.memory_space<vmem>>, vector<16x16xbf16>
    %13 = arith.extf %12 : vector<16x16xbf16> to vector<16x16xf32>
    %c0_19 = arith.constant 0 : index
    %c0_20 = arith.constant 0 : index
    %14 = vector.load %arg9[%c0_19, %c0_20] : memref<1x16xbf16, #tpu.memory_space<vmem>>, vector<1x16xbf16>
    %15 = arith.extf %14 : vector<1x16xbf16> to vector<1x16xf32>
    %c0_21 = arith.constant 0 : index
    %c0_22 = arith.constant 0 : index
    %16 = vector.load %arg10[%c0_21, %c0_22] : memref<8x128xf32, #tpu.memory_space<vmem>>, vector<8x128xf32>
    %17 = vector.extract_strided_slice %16 {offsets = [0, 0], sizes = [1, 128], strides = [1, 1]} : vector<8x128xf32> to vector<1x128xf32>
    %18 = vector.extract_strided_slice %16 {offsets = [1, 0], sizes = [1, 128], strides = [1, 1]} : vector<8x128xf32> to vector<1x128xf32>
    %19 = vector.extract_strided_slice %16 {offsets = [2, 0], sizes = [1, 128], strides = [1, 1]} : vector<8x128xf32> to vector<1x128xf32>
    %20 = vector.extract_strided_slice %16 {offsets = [3, 0], sizes = [1, 128], strides = [1, 1]} : vector<8x128xf32> to vector<1x128xf32>
    %21 = vector.extract_strided_slice %16 {offsets = [4, 0], sizes = [1, 128], strides = [1, 1]} : vector<8x128xf32> to vector<1x128xf32>
    %22 = vector.extract_strided_slice %16 {offsets = [5, 0], sizes = [1, 128], strides = [1, 1]} : vector<8x128xf32> to vector<1x128xf32>
    %23 = vector.extract_strided_slice %16 {offsets = [6, 0], sizes = [1, 128], strides = [1, 1]} : vector<8x128xf32> to vector<1x128xf32>
    %24 = vector.extract_strided_slice %16 {offsets = [7, 0], sizes = [1, 128], strides = [1, 1]} : vector<8x128xf32> to vector<1x128xf32>
    %c0_23 = arith.constant 0 : index
    %c0_24 = arith.constant 0 : index
    %25 = vector.load %arg11[%c0_23, %c0_24] : memref<1x256xf32, #tpu.memory_space<vmem>>, vector<1x256xf32>
    %26 = vector.extract_strided_slice %3 {offsets = [0, 0], sizes = [16, 32], strides = [1, 1]} : vector<16x128xbf16> to vector<16x32xbf16>
    %27 = vector.extract_strided_slice %5 {offsets = [0, 0], sizes = [32, 16], strides = [1, 1]} : vector<128x16xbf16> to vector<32x16xbf16>
    %cst = arith.constant dense<0.000000e+00> : vector<16x16xf32>
    %28 = tpu.matmul %26, %27, %cst {dimension_numbers = #tpu.dot_dimension_numbers<[1], [0], [0], [1], [0, 0, 1, 1], [], []>} : vector<16x32xbf16>, vector<32x16xbf16>, vector<16x16xf32> -> vector<16x16xf32>
    %29 = arith.addf %28, %13 : vector<16x16xf32>
    %cst_25 = arith.constant dense<0xFF800000> : vector<16xf32>
    %30 = vector.multi_reduction <maximumf>, %29, %cst_25 [1] : vector<16x16xf32> to vector<16xf32>
    %31 = vector.shape_cast %30 : vector<16xf32> to vector<16x1xf32>
    %32 = vector.broadcast %31 : vector<16x1xf32> to vector<16x16xf32>
    %33 = arith.subf %29, %32 : vector<16x16xf32>
    %34 = math.exp %33 : vector<16x16xf32>
    %cst_26 = arith.constant dense<0.000000e+00> : vector<16xf32>
    %35 = vector.multi_reduction <add>, %34, %cst_26 [1] : vector<16x16xf32> to vector<16xf32>
    %36 = vector.shape_cast %35 : vector<16xf32> to vector<16x1xf32>
    %37 = tpu.reciprocal %36 {approx = true} : vector<16x1xf32> -> vector<16x1xf32>
    %38 = vector.broadcast %37 : vector<16x1xf32> to vector<16x16xf32>
    %39 = arith.mulf %34, %38 : vector<16x16xf32>
    %40 = arith.truncf %39 : vector<16x16xf32> to vector<16x16xbf16>
    %41 = vector.extract_strided_slice %7 {offsets = [0, 0], sizes = [16, 32], strides = [1, 1]} : vector<16x128xbf16> to vector<16x32xbf16>
    %cst_27 = arith.constant dense<0.000000e+00> : vector<16x32xf32>
    %42 = tpu.matmul %40, %41, %cst_27 {dimension_numbers = #tpu.dot_dimension_numbers<[1], [0], [0], [1], [0, 0, 1, 1], [], []>} : vector<16x16xbf16>, vector<16x32xbf16>, vector<16x32xf32> -> vector<16x32xf32>
    %43 = arith.truncf %42 : vector<16x32xf32> to vector<16x32xbf16>
    %c0_28 = arith.constant 0 : index
    %c0_29 = arith.constant 0 : index
    %44 = vector.load %arg18[%c0_28, %c0_29] : memref<16x128xbf16, #tpu.memory_space<vmem>>, vector<16x32xbf16>
    tpu.vector_store %arg18[%c0_28, %c0_29], %43 {strides = array<i32>} : memref<16x128xbf16, #tpu.memory_space<vmem>>, vector<16x32xbf16>,
    %45 = vector.extract_strided_slice %3 {offsets = [0, 32], sizes = [16, 32], strides = [1, 1]} : vector<16x128xbf16> to vector<16x32xbf16>
    %46 = vector.extract_strided_slice %5 {offsets = [32, 0], sizes = [32, 16], strides = [1, 1]} : vector<128x16xbf16> to vector<32x16xbf16>
    %cst_30 = arith.constant dense<0.000000e+00> : vector<16x16xf32>
    %47 = tpu.matmul %45, %46, %cst_30 {dimension_numbers = #tpu.dot_dimension_numbers<[1], [0], [0], [1], [0, 0, 1, 1], [], []>} : vector<16x32xbf16>, vector<32x16xbf16>, vector<16x16xf32> -> vector<16x16xf32>
    %48 = arith.addf %47, %13 : vector<16x16xf32>
    %cst_31 = arith.constant dense<0xFF800000> : vector<16xf32>
    %49 = vector.multi_reduction <maximumf>, %48, %cst_31 [1] : vector<16x16xf32> to vector<16xf32>
    %50 = vector.shape_cast %49 : vector<16xf32> to vector<16x1xf32>
    %51 = vector.broadcast %50 : vector<16x1xf32> to vector<16x16xf32>
    %52 = arith.subf %48, %51 : vector<16x16xf32>
    %53 = math.exp %52 : vector<16x16xf32>
    %cst_32 = arith.constant dense<0.000000e+00> : vector<16xf32>
    %54 = vector.multi_reduction <add>, %53, %cst_32 [1] : vector<16x16xf32> to vector<16xf32>
    %55 = vector.shape_cast %54 : vector<16xf32> to vector<16x1xf32>
    %56 = tpu.reciprocal %55 {approx = true} : vector<16x1xf32> -> vector<16x1xf32>
    %57 = vector.broadcast %56 : vector<16x1xf32> to vector<16x16xf32>
    %58 = arith.mulf %53, %57 : vector<16x16xf32>
    %59 = arith.truncf %58 : vector<16x16xf32> to vector<16x16xbf16>
    %60 = vector.extract_strided_slice %7 {offsets = [0, 32], sizes = [16, 32], strides = [1, 1]} : vector<16x128xbf16> to vector<16x32xbf16>
    %cst_33 = arith.constant dense<0.000000e+00> : vector<16x32xf32>
    %61 = tpu.matmul %59, %60, %cst_33 {dimension_numbers = #tpu.dot_dimension_numbers<[1], [0], [0], [1], [0, 0, 1, 1], [], []>} : vector<16x16xbf16>, vector<16x32xbf16>, vector<16x32xf32> -> vector<16x32xf32>
    %62 = arith.truncf %61 : vector<16x32xf32> to vector<16x32xbf16>
    %c0_34 = arith.constant 0 : index
    %c32 = arith.constant 32 : index
    %63 = vector.load %arg18[%c0_34, %c32] : memref<16x128xbf16, #tpu.memory_space<vmem>>, vector<16x32xbf16>
    tpu.vector_store %arg18[%c0_34, %c32], %62 {strides = array<i32>} : memref<16x128xbf16, #tpu.memory_space<vmem>>, vector<16x32xbf16>,
    %64 = vector.extract_strided_slice %3 {offsets = [0, 64], sizes = [16, 32], strides = [1, 1]} : vector<16x128xbf16> to vector<16x32xbf16>
    %65 = vector.extract_strided_slice %5 {offsets = [64, 0], sizes = [32, 16], strides = [1, 1]} : vector<128x16xbf16> to vector<32x16xbf16>
    %cst_35 = arith.constant dense<0.000000e+00> : vector<16x16xf32>
    %66 = tpu.matmul %64, %65, %cst_35 {dimension_numbers = #tpu.dot_dimension_numbers<[1], [0], [0], [1], [0, 0, 1, 1], [], []>} : vector<16x32xbf16>, vector<32x16xbf16>, vector<16x16xf32> -> vector<16x16xf32>
    %67 = arith.addf %66, %13 : vector<16x16xf32>
    %cst_36 = arith.constant dense<0xFF800000> : vector<16xf32>
    %68 = vector.multi_reduction <maximumf>, %67, %cst_36 [1] : vector<16x16xf32> to vector<16xf32>
    %69 = vector.shape_cast %68 : vector<16xf32> to vector<16x1xf32>
    %70 = vector.broadcast %69 : vector<16x1xf32> to vector<16x16xf32>
    %71 = arith.subf %67, %70 : vector<16x16xf32>
    %72 = math.exp %71 : vector<16x16xf32>
    %cst_37 = arith.constant dense<0.000000e+00> : vector<16xf32>
    %73 = vector.multi_reduction <add>, %72, %cst_37 [1] : vector<16x16xf32> to vector<16xf32>
    %74 = vector.shape_cast %73 : vector<16xf32> to vector<16x1xf32>
    %75 = tpu.reciprocal %74 {approx = true} : vector<16x1xf32> -> vector<16x1xf32>
    %76 = vector.broadcast %75 : vector<16x1xf32> to vector<16x16xf32>
    %77 = arith.mulf %72, %76 : vector<16x16xf32>
    %78 = arith.truncf %77 : vector<16x16xf32> to vector<16x16xbf16>
    %79 = vector.extract_strided_slice %7 {offsets = [0, 64], sizes = [16, 32], strides = [1, 1]} : vector<16x128xbf16> to vector<16x32xbf16>
    %cst_38 = arith.constant dense<0.000000e+00> : vector<16x32xf32>
    %80 = tpu.matmul %78, %79, %cst_38 {dimension_numbers = #tpu.dot_dimension_numbers<[1], [0], [0], [1], [0, 0, 1, 1], [], []>} : vector<16x16xbf16>, vector<16x32xbf16>, vector<16x32xf32> -> vector<16x32xf32>
    %81 = arith.truncf %80 : vector<16x32xf32> to vector<16x32xbf16>
    %c0_39 = arith.constant 0 : index
    %c64 = arith.constant 64 : index
    %82 = vector.load %arg18[%c0_39, %c64] : memref<16x128xbf16, #tpu.memory_space<vmem>>, vector<16x32xbf16>
    tpu.vector_store %arg18[%c0_39, %c64], %81 {strides = array<i32>} : memref<16x128xbf16, #tpu.memory_space<vmem>>, vector<16x32xbf16>,
    %83 = vector.extract_strided_slice %3 {offsets = [0, 96], sizes = [16, 32], strides = [1, 1]} : vector<16x128xbf16> to vector<16x32xbf16>
    %84 = vector.extract_strided_slice %5 {offsets = [96, 0], sizes = [32, 16], strides = [1, 1]} : vector<128x16xbf16> to vector<32x16xbf16>
    %cst_40 = arith.constant dense<0.000000e+00> : vector<16x16xf32>
    %85 = tpu.matmul %83, %84, %cst_40 {dimension_numbers = #tpu.dot_dimension_numbers<[1], [0], [0], [1], [0, 0, 1, 1], [], []>} : vector<16x32xbf16>, vector<32x16xbf16>, vector<16x16xf32> -> vector<16x16xf32>
    %86 = arith.addf %85, %13 : vector<16x16xf32>
    %cst_41 = arith.constant dense<0xFF800000> : vector<16xf32>
    %87 = vector.multi_reduction <maximumf>, %86, %cst_41 [1] : vector<16x16xf32> to vector<16xf32>
    %88 = vector.shape_cast %87 : vector<16xf32> to vector<16x1xf32>
    %89 = vector.broadcast %88 : vector<16x1xf32> to vector<16x16xf32>
    %90 = arith.subf %86, %89 : vector<16x16xf32>
    %91 = math.exp %90 : vector<16x16xf32>
    %cst_42 = arith.constant dense<0.000000e+00> : vector<16xf32>
    %92 = vector.multi_reduction <add>, %91, %cst_42 [1] : vector<16x16xf32> to vector<16xf32>
    %93 = vector.shape_cast %92 : vector<16xf32> to vector<16x1xf32>
    %94 = tpu.reciprocal %93 {approx = true} : vector<16x1xf32> -> vector<16x1xf32>
    %95 = vector.broadcast %94 : vector<16x1xf32> to vector<16x16xf32>
    %96 = arith.mulf %91, %95 : vector<16x16xf32>
    %97 = arith.truncf %96 : vector<16x16xf32> to vector<16x16xbf16>
    %98 = vector.extract_strided_slice %7 {offsets = [0, 96], sizes = [16, 32], strides = [1, 1]} : vector<16x128xbf16> to vector<16x32xbf16>
    %cst_43 = arith.constant dense<0.000000e+00> : vector<16x32xf32>
    %99 = tpu.matmul %97, %98, %cst_43 {dimension_numbers = #tpu.dot_dimension_numbers<[1], [0], [0], [1], [0, 0, 1, 1], [], []>} : vector<16x16xbf16>, vector<16x32xbf16>, vector<16x32xf32> -> vector<16x32xf32>
    %100 = arith.truncf %99 : vector<16x32xf32> to vector<16x32xbf16>
    %c0_44 = arith.constant 0 : index
    %c96 = arith.constant 96 : index
    %101 = vector.load %arg18[%c0_44, %c96] : memref<16x128xbf16, #tpu.memory_space<vmem>>, vector<16x32xbf16>
    tpu.vector_store %arg18[%c0_44, %c96], %100 {strides = array<i32>} : memref<16x128xbf16, #tpu.memory_space<vmem>>, vector<16x32xbf16>,
    %c0_45 = arith.constant 0 : index
    %c0_46 = arith.constant 0 : index
    %102 = vector.load %arg18[%c0_45, %c0_46] : memref<16x128xbf16, #tpu.memory_space<vmem>>, vector<16x128xbf16>
    %c0_47 = arith.constant 0 : index
    %c0_48 = arith.constant 0 : index
    %103 = vector.load %arg13[%c0_47, %c0_48] : memref<128x128xbf16, #tpu.memory_space<vmem>>, vector<128x128xbf16>
    %cst_49 = arith.constant dense<0.000000e+00> : vector<16x128xf32>
    %104 = tpu.matmul %102, %103, %cst_49 {dimension_numbers = #tpu.dot_dimension_numbers<[1], [0], [0], [1], [0, 0, 1, 1], [], []>} : vector<16x128xbf16>, vector<128x128xbf16>, vector<16x128xf32> -> vector<16x128xf32>
    %105 = vector.broadcast %22 : vector<1x128xf32> to vector<16x128xf32>
    %106 = arith.addf %104, %105 : vector<16x128xf32>
    %107 = arith.addf %1, %106 : vector<16x128xf32>
    %cst_50 = arith.constant dense<0.000000e+00> : vector<16xf32>
    %108 = vector.multi_reduction <add>, %107, %cst_50 [1] : vector<16x128xf32> to vector<16xf32>
    %109 = vector.shape_cast %108 : vector<16xf32> to vector<16x1xf32>
    %cst_51 = arith.constant 1.280000e+02 : f32
    %110 = vector.broadcast %cst_51 : f32 to vector<16x1xf32>
    %111 = arith.divf %109, %110 : vector<16x1xf32>
    %112 = vector.broadcast %111 : vector<16x1xf32> to vector<16x128xf32>
    %113 = arith.subf %107, %112 : vector<16x128xf32>
    %114 = arith.mulf %113, %113 : vector<16x128xf32>
    %cst_52 = arith.constant dense<0.000000e+00> : vector<16xf32>
    %115 = vector.multi_reduction <add>, %114, %cst_52 [1] : vector<16x128xf32> to vector<16xf32>
    %116 = vector.shape_cast %115 : vector<16xf32> to vector<16x1xf32>
    %cst_53 = arith.constant 0.00787401571 : f32
    %117 = vector.broadcast %cst_53 : f32 to vector<16x1xf32>
    %118 = arith.mulf %116, %117 : vector<16x1xf32>
    %119 = vector.broadcast %111 : vector<16x1xf32> to vector<16x128xf32>
    %120 = arith.subf %107, %119 : vector<16x128xf32>
    %121 = vector.broadcast %17 : vector<1x128xf32> to vector<16x128xf32>
    %122 = arith.mulf %121, %120 : vector<16x128xf32>
    %123 = math.sqrt %118 : vector<16x1xf32>
    %cst_54 = arith.constant 9.99999997E-7 : f32
    %124 = vector.broadcast %cst_54 : f32 to vector<16x1xf32>
    %125 = arith.addf %123, %124 : vector<16x1xf32>
    %126 = vector.broadcast %125 : vector<16x1xf32> to vector<16x128xf32>
    %127 = arith.divf %122, %126 : vector<16x128xf32>
    %128 = vector.broadcast %18 : vector<1x128xf32> to vector<16x128xf32>
    %129 = arith.addf %127, %128 : vector<16x128xf32>
    %130 = arith.truncf %129 : vector<16x128xf32> to vector<16x128xbf16>
    %c0_55 = arith.constant 0 : index
    %c0_56 = arith.constant 0 : index
    %131 = vector.load %arg12[%c0_55, %c0_56] : memref<128x128xbf16, #tpu.memory_space<vmem>>, vector<128x128xbf16>
    %cst_57 = arith.constant dense<0.000000e+00> : vector<16x128xf32>
    %132 = tpu.matmul %130, %131, %cst_57 {dimension_numbers = #tpu.dot_dimension_numbers<[1], [0], [0], [1], [0, 0, 1, 1], [], []>} : vector<16x128xbf16>, vector<128x128xbf16>, vector<16x128xf32> -> vector<16x128xf32>
    %133 = vector.broadcast %21 : vector<1x128xf32> to vector<16x128xf32>
    %134 = arith.addf %132, %133 : vector<16x128xf32>
    %135 = arith.truncf %134 : vector<16x128xf32> to vector<16x128xbf16>
    %136 = vector.extract_strided_slice %135 {offsets = [0, 0], sizes = [16, 32], strides = [1, 1]} : vector<16x128xbf16> to vector<16x32xbf16>
    %137 = vector.extract_strided_slice %9 {offsets = [0, 0], sizes = [32, 16], strides = [1, 1]} : vector<128x16xbf16> to vector<32x16xbf16>
    %cst_58 = arith.constant dense<0.000000e+00> : vector<16x16xf32>
    %138 = tpu.matmul %136, %137, %cst_58 {dimension_numbers = #tpu.dot_dimension_numbers<[1], [0], [0], [1], [0, 0, 1, 1], [], []>} : vector<16x32xbf16>, vector<32x16xbf16>, vector<16x16xf32> -> vector<16x16xf32>
    %139 = vector.broadcast %15 : vector<1x16xf32> to vector<16x16xf32>
    %140 = arith.addf %138, %139 : vector<16x16xf32>
    %cst_59 = arith.constant dense<0xFF800000> : vector<16xf32>
    %141 = vector.multi_reduction <maximumf>, %140, %cst_59 [1] : vector<16x16xf32> to vector<16xf32>
    %142 = vector.shape_cast %141 : vector<16xf32> to vector<16x1xf32>
    %143 = vector.broadcast %142 : vector<16x1xf32> to vector<16x16xf32>
    %144 = arith.subf %140, %143 : vector<16x16xf32>
    %145 = math.exp %144 : vector<16x16xf32>
    %cst_60 = arith.constant dense<0.000000e+00> : vector<16xf32>
    %146 = vector.multi_reduction <add>, %145, %cst_60 [1] : vector<16x16xf32> to vector<16xf32>
    %147 = vector.shape_cast %146 : vector<16xf32> to vector<16x1xf32>
    %148 = tpu.reciprocal %147 {approx = true} : vector<16x1xf32> -> vector<16x1xf32>
    %149 = vector.broadcast %148 : vector<16x1xf32> to vector<16x16xf32>
    %150 = arith.mulf %145, %149 : vector<16x16xf32>
    %151 = arith.truncf %150 : vector<16x16xf32> to vector<16x16xbf16>
    %152 = vector.extract_strided_slice %11 {offsets = [0, 0], sizes = [16, 32], strides = [1, 1]} : vector<16x128xbf16> to vector<16x32xbf16>
    %cst_61 = arith.constant dense<0.000000e+00> : vector<16x32xf32>
    %153 = tpu.matmul %151, %152, %cst_61 {dimension_numbers = #tpu.dot_dimension_numbers<[1], [0], [0], [1], [0, 0, 1, 1], [], []>} : vector<16x16xbf16>, vector<16x32xbf16>, vector<16x32xf32> -> vector<16x32xf32>
    %154 = arith.truncf %153 : vector<16x32xf32> to vector<16x32xbf16>
    %c0_62 = arith.constant 0 : index
    %c0_63 = arith.constant 0 : index
    %155 = vector.load %arg18[%c0_62, %c0_63] : memref<16x128xbf16, #tpu.memory_space<vmem>>, vector<16x32xbf16>
    tpu.vector_store %arg18[%c0_62, %c0_63], %154 {strides = array<i32>} : memref<16x128xbf16, #tpu.memory_space<vmem>>, vector<16x32xbf16>,
    %156 = vector.extract_strided_slice %135 {offsets = [0, 32], sizes = [16, 32], strides = [1, 1]} : vector<16x128xbf16> to vector<16x32xbf16>
    %157 = vector.extract_strided_slice %9 {offsets = [32, 0], sizes = [32, 16], strides = [1, 1]} : vector<128x16xbf16> to vector<32x16xbf16>
    %cst_64 = arith.constant dense<0.000000e+00> : vector<16x16xf32>
    %158 = tpu.matmul %156, %157, %cst_64 {dimension_numbers = #tpu.dot_dimension_numbers<[1], [0], [0], [1], [0, 0, 1, 1], [], []>} : vector<16x32xbf16>, vector<32x16xbf16>, vector<16x16xf32> -> vector<16x16xf32>
    %159 = vector.broadcast %15 : vector<1x16xf32> to vector<16x16xf32>
    %160 = arith.addf %158, %159 : vector<16x16xf32>
    %cst_65 = arith.constant dense<0xFF800000> : vector<16xf32>
    %161 = vector.multi_reduction <maximumf>, %160, %cst_65 [1] : vector<16x16xf32> to vector<16xf32>
    %162 = vector.shape_cast %161 : vector<16xf32> to vector<16x1xf32>
    %163 = vector.broadcast %162 : vector<16x1xf32> to vector<16x16xf32>
    %164 = arith.subf %160, %163 : vector<16x16xf32>
    %165 = math.exp %164 : vector<16x16xf32>
    %cst_66 = arith.constant dense<0.000000e+00> : vector<16xf32>
    %166 = vector.multi_reduction <add>, %165, %cst_66 [1] : vector<16x16xf32> to vector<16xf32>
    %167 = vector.shape_cast %166 : vector<16xf32> to vector<16x1xf32>
    %168 = tpu.reciprocal %167 {approx = true} : vector<16x1xf32> -> vector<16x1xf32>
    %169 = vector.broadcast %168 : vector<16x1xf32> to vector<16x16xf32>
    %170 = arith.mulf %165, %169 : vector<16x16xf32>
    %171 = arith.truncf %170 : vector<16x16xf32> to vector<16x16xbf16>
    %172 = vector.extract_strided_slice %11 {offsets = [0, 32], sizes = [16, 32], strides = [1, 1]} : vector<16x128xbf16> to vector<16x32xbf16>
    %cst_67 = arith.constant dense<0.000000e+00> : vector<16x32xf32>
    %173 = tpu.matmul %171, %172, %cst_67 {dimension_numbers = #tpu.dot_dimension_numbers<[1], [0], [0], [1], [0, 0, 1, 1], [], []>} : vector<16x16xbf16>, vector<16x32xbf16>, vector<16x32xf32> -> vector<16x32xf32>
    %174 = arith.truncf %173 : vector<16x32xf32> to vector<16x32xbf16>
    %c0_68 = arith.constant 0 : index
    %c32_69 = arith.constant 32 : index
    %175 = vector.load %arg18[%c0_68, %c32_69] : memref<16x128xbf16, #tpu.memory_space<vmem>>, vector<16x32xbf16>
    tpu.vector_store %arg18[%c0_68, %c32_69], %174 {strides = array<i32>} : memref<16x128xbf16, #tpu.memory_space<vmem>>, vector<16x32xbf16>,
    %176 = vector.extract_strided_slice %135 {offsets = [0, 64], sizes = [16, 32], strides = [1, 1]} : vector<16x128xbf16> to vector<16x32xbf16>
    %177 = vector.extract_strided_slice %9 {offsets = [64, 0], sizes = [32, 16], strides = [1, 1]} : vector<128x16xbf16> to vector<32x16xbf16>
    %cst_70 = arith.constant dense<0.000000e+00> : vector<16x16xf32>
    %178 = tpu.matmul %176, %177, %cst_70 {dimension_numbers = #tpu.dot_dimension_numbers<[1], [0], [0], [1], [0, 0, 1, 1], [], []>} : vector<16x32xbf16>, vector<32x16xbf16>, vector<16x16xf32> -> vector<16x16xf32>
    %179 = vector.broadcast %15 : vector<1x16xf32> to vector<16x16xf32>
    %180 = arith.addf %178, %179 : vector<16x16xf32>
    %cst_71 = arith.constant dense<0xFF800000> : vector<16xf32>
    %181 = vector.multi_reduction <maximumf>, %180, %cst_71 [1] : vector<16x16xf32> to vector<16xf32>
    %182 = vector.shape_cast %181 : vector<16xf32> to vector<16x1xf32>
    %183 = vector.broadcast %182 : vector<16x1xf32> to vector<16x16xf32>
    %184 = arith.subf %180, %183 : vector<16x16xf32>
    %185 = math.exp %184 : vector<16x16xf32>
    %cst_72 = arith.constant dense<0.000000e+00> : vector<16xf32>
    %186 = vector.multi_reduction <add>, %185, %cst_72 [1] : vector<16x16xf32> to vector<16xf32>
    %187 = vector.shape_cast %186 : vector<16xf32> to vector<16x1xf32>
    %188 = tpu.reciprocal %187 {approx = true} : vector<16x1xf32> -> vector<16x1xf32>
    %189 = vector.broadcast %188 : vector<16x1xf32> to vector<16x16xf32>
    %190 = arith.mulf %185, %189 : vector<16x16xf32>
    %191 = arith.truncf %190 : vector<16x16xf32> to vector<16x16xbf16>
    %192 = vector.extract_strided_slice %11 {offsets = [0, 64], sizes = [16, 32], strides = [1, 1]} : vector<16x128xbf16> to vector<16x32xbf16>
    %cst_73 = arith.constant dense<0.000000e+00> : vector<16x32xf32>
    %193 = tpu.matmul %191, %192, %cst_73 {dimension_numbers = #tpu.dot_dimension_numbers<[1], [0], [0], [1], [0, 0, 1, 1], [], []>} : vector<16x16xbf16>, vector<16x32xbf16>, vector<16x32xf32> -> vector<16x32xf32>
    %194 = arith.truncf %193 : vector<16x32xf32> to vector<16x32xbf16>
    %c0_74 = arith.constant 0 : index
    %c64_75 = arith.constant 64 : index
    %195 = vector.load %arg18[%c0_74, %c64_75] : memref<16x128xbf16, #tpu.memory_space<vmem>>, vector<16x32xbf16>
    tpu.vector_store %arg18[%c0_74, %c64_75], %194 {strides = array<i32>} : memref<16x128xbf16, #tpu.memory_space<vmem>>, vector<16x32xbf16>,
    %196 = vector.extract_strided_slice %135 {offsets = [0, 96], sizes = [16, 32], strides = [1, 1]} : vector<16x128xbf16> to vector<16x32xbf16>
    %197 = vector.extract_strided_slice %9 {offsets = [96, 0], sizes = [32, 16], strides = [1, 1]} : vector<128x16xbf16> to vector<32x16xbf16>
    %cst_76 = arith.constant dense<0.000000e+00> : vector<16x16xf32>
    %198 = tpu.matmul %196, %197, %cst_76 {dimension_numbers = #tpu.dot_dimension_numbers<[1], [0], [0], [1], [0, 0, 1, 1], [], []>} : vector<16x32xbf16>, vector<32x16xbf16>, vector<16x16xf32> -> vector<16x16xf32>
    %199 = vector.broadcast %15 : vector<1x16xf32> to vector<16x16xf32>
    %200 = arith.addf %198, %199 : vector<16x16xf32>
    %cst_77 = arith.constant dense<0xFF800000> : vector<16xf32>
    %201 = vector.multi_reduction <maximumf>, %200, %cst_77 [1] : vector<16x16xf32> to vector<16xf32>
    %202 = vector.shape_cast %201 : vector<16xf32> to vector<16x1xf32>
    %203 = vector.broadcast %202 : vector<16x1xf32> to vector<16x16xf32>
    %204 = arith.subf %200, %203 : vector<16x16xf32>
    %205 = math.exp %204 : vector<16x16xf32>
    %cst_78 = arith.constant dense<0.000000e+00> : vector<16xf32>
    %206 = vector.multi_reduction <add>, %205, %cst_78 [1] : vector<16x16xf32> to vector<16xf32>
    %207 = vector.shape_cast %206 : vector<16xf32> to vector<16x1xf32>
    %208 = tpu.reciprocal %207 {approx = true} : vector<16x1xf32> -> vector<16x1xf32>
    %209 = vector.broadcast %208 : vector<16x1xf32> to vector<16x16xf32>
    %210 = arith.mulf %205, %209 : vector<16x16xf32>
    %211 = arith.truncf %210 : vector<16x16xf32> to vector<16x16xbf16>
    %212 = vector.extract_strided_slice %11 {offsets = [0, 96], sizes = [16, 32], strides = [1, 1]} : vector<16x128xbf16> to vector<16x32xbf16>
    %cst_79 = arith.constant dense<0.000000e+00> : vector<16x32xf32>
    %213 = tpu.matmul %211, %212, %cst_79 {dimension_numbers = #tpu.dot_dimension_numbers<[1], [0], [0], [1], [0, 0, 1, 1], [], []>} : vector<16x16xbf16>, vector<16x32xbf16>, vector<16x32xf32> -> vector<16x32xf32>
    %214 = arith.truncf %213 : vector<16x32xf32> to vector<16x32xbf16>
    %c0_80 = arith.constant 0 : index
    %c96_81 = arith.constant 96 : index
    %215 = vector.load %arg18[%c0_80, %c96_81] : memref<16x128xbf16, #tpu.memory_space<vmem>>, vector<16x32xbf16>
    tpu.vector_store %arg18[%c0_80, %c96_81], %214 {strides = array<i32>} : memref<16x128xbf16, #tpu.memory_space<vmem>>, vector<16x32xbf16>,
    %c0_82 = arith.constant 0 : index
    %c0_83 = arith.constant 0 : index
    %216 = vector.load %arg18[%c0_82, %c0_83] : memref<16x128xbf16, #tpu.memory_space<vmem>>, vector<16x128xbf16>
    %c0_84 = arith.constant 0 : index
    %c0_85 = arith.constant 0 : index
    %217 = vector.load %arg14[%c0_84, %c0_85] : memref<128x128xbf16, #tpu.memory_space<vmem>>, vector<128x128xbf16>
    %cst_86 = arith.constant dense<0.000000e+00> : vector<16x128xf32>
    %218 = tpu.matmul %216, %217, %cst_86 {dimension_numbers = #tpu.dot_dimension_numbers<[1], [0], [0], [1], [0, 0, 1, 1], [], []>} : vector<16x128xbf16>, vector<128x128xbf16>, vector<16x128xf32> -> vector<16x128xf32>
    %219 = vector.broadcast %23 : vector<1x128xf32> to vector<16x128xf32>
    %220 = arith.addf %218, %219 : vector<16x128xf32>
    %221 = arith.addf %107, %220 : vector<16x128xf32>
    %cst_87 = arith.constant dense<0.000000e+00> : vector<16xf32>
    %222 = vector.multi_reduction <add>, %221, %cst_87 [1] : vector<16x128xf32> to vector<16xf32>
    %223 = vector.shape_cast %222 : vector<16xf32> to vector<16x1xf32>
    %cst_88 = arith.constant 1.280000e+02 : f32
    %224 = vector.broadcast %cst_88 : f32 to vector<16x1xf32>
    %225 = arith.divf %223, %224 : vector<16x1xf32>
    %226 = vector.broadcast %225 : vector<16x1xf32> to vector<16x128xf32>
    %227 = arith.subf %221, %226 : vector<16x128xf32>
    %228 = arith.mulf %227, %227 : vector<16x128xf32>
    %cst_89 = arith.constant dense<0.000000e+00> : vector<16xf32>
    %229 = vector.multi_reduction <add>, %228, %cst_89 [1] : vector<16x128xf32> to vector<16xf32>
    %230 = vector.shape_cast %229 : vector<16xf32> to vector<16x1xf32>
    %cst_90 = arith.constant 0.00787401571 : f32
    %231 = vector.broadcast %cst_90 : f32 to vector<16x1xf32>
    %232 = arith.mulf %230, %231 : vector<16x1xf32>
    %233 = vector.broadcast %225 : vector<16x1xf32> to vector<16x128xf32>
    %234 = arith.subf %221, %233 : vector<16x128xf32>
    %235 = vector.broadcast %19 : vector<1x128xf32> to vector<16x128xf32>
    %236 = arith.mulf %235, %234 : vector<16x128xf32>
    %237 = math.sqrt %232 : vector<16x1xf32>
    %cst_91 = arith.constant 9.99999997E-7 : f32
    %238 = vector.broadcast %cst_91 : f32 to vector<16x1xf32>
    %239 = arith.addf %237, %238 : vector<16x1xf32>
    %240 = vector.broadcast %239 : vector<16x1xf32> to vector<16x128xf32>
    %241 = arith.divf %236, %240 : vector<16x128xf32>
    %242 = vector.broadcast %20 : vector<1x128xf32> to vector<16x128xf32>
    %243 = arith.addf %241, %242 : vector<16x128xf32>
    %244 = arith.truncf %243 : vector<16x128xf32> to vector<16x128xbf16>
    %c0_92 = arith.constant 0 : index
    %c0_93 = arith.constant 0 : index
    %245 = vector.load %arg15[%c0_92, %c0_93] : memref<128x256xbf16, #tpu.memory_space<vmem>>, vector<128x256xbf16>
    %cst_94 = arith.constant dense<0.000000e+00> : vector<16x256xf32>
    %246 = tpu.matmul %244, %245, %cst_94 {dimension_numbers = #tpu.dot_dimension_numbers<[1], [0], [0], [1], [0, 0, 1, 1], [], []>} : vector<16x128xbf16>, vector<128x256xbf16>, vector<16x256xf32> -> vector<16x256xf32>
    %247 = vector.broadcast %25 : vector<1x256xf32> to vector<16x256xf32>
    %248 = arith.addf %246, %247 : vector<16x256xf32>
    %cst_95 = arith.constant 0.000000e+00 : f32
    %249 = vector.broadcast %cst_95 : f32 to vector<16x256xf32>
    %250 = arith.maximumf %248, %249 : vector<16x256xf32>
    %251 = arith.truncf %250 : vector<16x256xf32> to vector<16x256xbf16>
    %c0_96 = arith.constant 0 : index
    %c0_97 = arith.constant 0 : index
    %252 = vector.load %arg16[%c0_96, %c0_97] : memref<256x128xbf16, #tpu.memory_space<vmem>>, vector<256x128xbf16>
    %cst_98 = arith.constant dense<0.000000e+00> : vector<16x128xf32>
    %253 = tpu.matmul %251, %252, %cst_98 {dimension_numbers = #tpu.dot_dimension_numbers<[1], [0], [0], [1], [0, 0, 1, 1], [], []>} : vector<16x256xbf16>, vector<256x128xbf16>, vector<16x128xf32> -> vector<16x128xf32>
    %254 = arith.addf %221, %253 : vector<16x128xf32>
    %255 = vector.broadcast %24 : vector<1x128xf32> to vector<16x128xf32>
    %256 = arith.addf %254, %255 : vector<16x128xf32>
    %c0_99 = arith.constant 0 : index
    %c0_100 = arith.constant 0 : index
    %c0_101 = arith.constant 0 : index
    %257 = vector.load %arg17[%c0_99, %c0_100, %c0_101] : memref<1x16x128xf32, #tpu.memory_space<vmem>>, vector<1x16x128xf32>
    %258 = vector.shape_cast %257 : vector<1x16x128xf32> to vector<16x128xf32>
    %259 = vector.shape_cast %256 : vector<16x128xf32> to vector<1x16x128xf32>
    tpu.vector_store %arg17[%c0_99, %c0_100, %c0_101], %259 {strides = array<i32>} : memref<1x16x128xf32, #tpu.memory_space<vmem>>, vector<1x16x128xf32>,
    return
  }
  func.func @transform_0(%arg0: i32, %arg1: i32) -> (i32, i32, i32) {
    %c0_i32 = arith.constant 0 : i32
    %c0_i32_0 = arith.constant 0 : i32
    return %arg0, %arg1, %c0_i32 : i32, i32, i32
  }
  func.func @transform_1(%arg0: i32, %arg1: i32) -> (i32, i32, i32) {
    %c0_i32 = arith.constant 0 : i32
    %c0_i32_0 = arith.constant 0 : i32
    return %arg0, %arg1, %c0_i32 : i32, i32, i32
  }
  func.func @transform_2(%arg0: i32, %arg1: i32) -> (i32, i32, i32) {
    %c0_i32 = arith.constant 0 : i32
    %c0_i32_0 = arith.constant 0 : i32
    %c0_i32_1 = arith.constant 0 : i32
    return %arg0, %c0_i32, %c0_i32_0 : i32, i32, i32
  }
  func.func @transform_3(%arg0: i32, %arg1: i32) -> (i32, i32, i32) {
    %c0_i32 = arith.constant 0 : i32
    %c0_i32_0 = arith.constant 0 : i32
    %c0_i32_1 = arith.constant 0 : i32
    return %arg0, %c0_i32, %c0_i32_0 : i32, i32, i32
  }
  func.func @transform_4(%arg0: i32, %arg1: i32) -> (i32, i32, i32) {
    %c0_i32 = arith.constant 0 : i32
    %c0_i32_0 = arith.constant 0 : i32
    %c0_i32_1 = arith.constant 0 : i32
    return %arg0, %c0_i32, %c0_i32_0 : i32, i32, i32
  }
  func.func @transform_5(%arg0: i32, %arg1: i32) -> (i32, i32, i32) {
    %c0_i32 = arith.constant 0 : i32
    %c0_i32_0 = arith.constant 0 : i32
    %c0_i32_1 = arith.constant 0 : i32
    return %arg0, %c0_i32, %c0_i32_0 : i32, i32, i32
  }
  func.func @transform_6(%arg0: i32, %arg1: i32) -> (i32, i32) {
    %c0_i32 = arith.constant 0 : i32
    %c0_i32_0 = arith.constant 0 : i32
    return %arg1, %c0_i32 : i32, i32
  }
  func.func @transform_7(%arg0: i32, %arg1: i32) -> (i32, i32) {
    %c0_i32 = arith.constant 0 : i32
    %c0_i32_0 = arith.constant 0 : i32
    %c0_i32_1 = arith.constant 0 : i32
    return %c0_i32, %c0_i32_0 : i32, i32
  }
  func.func @transform_8(%arg0: i32, %arg1: i32) -> (i32, i32) {
    %c0_i32 = arith.constant 0 : i32
    %c0_i32_0 = arith.constant 0 : i32
    %c0_i32_1 = arith.constant 0 : i32
    return %c0_i32, %c0_i32_0 : i32, i32
  }
  func.func @transform_9(%arg0: i32, %arg1: i32) -> (i32, i32) {
    %c0_i32 = arith.constant 0 : i32
    %c0_i32_0 = arith.constant 0 : i32
    %c0_i32_1 = arith.constant 0 : i32
    return %c0_i32, %c0_i32_0 : i32, i32
  }
  func.func @transform_10(%arg0: i32, %arg1: i32) -> (i32, i32) {
    %c0_i32 = arith.constant 0 : i32
    %c0_i32_0 = arith.constant 0 : i32
    %c0_i32_1 = arith.constant 0 : i32
    return %c0_i32, %c0_i32_0 : i32, i32
  }
  func.func @transform_11(%arg0: i32, %arg1: i32) -> (i32, i32) {
    %c0_i32 = arith.constant 0 : i32
    %c0_i32_0 = arith.constant 0 : i32
    %c0_i32_1 = arith.constant 0 : i32
    return %c0_i32, %c0_i32_0 : i32, i32
  }
  func.func @transform_12(%arg0: i32, %arg1: i32) -> (i32, i32) {
    %c0_i32 = arith.constant 0 : i32
    %c0_i32_0 = arith.constant 0 : i32
    %c0_i32_1 = arith.constant 0 : i32
    return %c0_i32, %c0_i32_0 : i32, i32
  }
  func.func @transform_13(%arg0: i32, %arg1: i32) -> (i32, i32) {
    %c0_i32 = arith.constant 0 : i32
    %c0_i32_0 = arith.constant 0 : i32
    %c0_i32_1 = arith.constant 0 : i32
    return %c0_i32, %c0_i32_0 : i32, i32
  }
  func.func @transform_14(%arg0: i32, %arg1: i32) -> (i32, i32) {
    %c0_i32 = arith.constant 0 : i32
    %c0_i32_0 = arith.constant 0 : i32
    %c0_i32_1 = arith.constant 0 : i32
    return %c0_i32, %c0_i32_0 : i32, i32
  }
  func.func @transform_15(%arg0: i32, %arg1: i32) -> (i32, i32, i32) {
    %c0_i32 = arith.constant 0 : i32
    %c0_i32_0 = arith.constant 0 : i32
    return %arg0, %arg1, %c0_i32 : i32, i32, i32
  }
}

</mosaic_0001>

<bundles_post_ra>
// kernel: tpu_custom_call.1
= control target key start
LH: loop header
LB: loop body
LE: loop exit
PB: predicated region body
PF: predicated region fallthrough
CT: control target
= control target key end

     0   :  { %s4953_s0 = inlined_call_operand.hbm [shape: f32[2,16,128], index: 0, kind: input, shape index: {}]   ;;  %s4954_s1 = inlined_call_operand.hbm [shape: bf16[2,16,128], index: 1, kind: input, shape index: {}]   ;;  %s4955_s2 = inlined_call_operand.vmem [shape: bf16[2,128,16], index: 2, kind: input, shape index: {}]   ;;  %s4956_s3 = inlined_call_operand.hbm [shape: bf16[2,16,128], index: 3, kind: input, shape index: {}]   ;;  %s4957_s4 = inlined_call_operand.vmem [shape: bf16[2,128,16], index: 4, kind: input, shape index: {}]   ;;  %s4958_s5 = inlined_call_operand.hbm [shape: bf16[2,16,128], index: 5, kind: input, shape index: {}]   ;;  %s4959_s6 = inlined_call_operand.hbm [shape: bf16[16,16], index: 6, kind: input, shape index: {}]   ;;  %s4960_s7 = inlined_call_operand.hbm [shape: bf16[1,16], index: 7, kind: input, shape index: {}]   ;;  %s4961_s8 = inlined_call_operand.hbm [shape: f32[8,128], index: 8, kind: input, shape index: {}]   ;;  %s4962_s9 = inlined_call_operand.vmem [shape: f32[1,256], index: 9, kind: input, shape index: {}]   ;;  %s4963_s10 = inlined_call_operand.vmem [shape: bf16[128,128], index: 10, kind: input, shape index: {}]   ;;  %s4964_s11 = inlined_call_operand.hbm [shape: bf16[128,128], index: 11, kind: input, shape index: {}]   ;;  %s4965_s12 = inlined_call_operand.hbm [shape: bf16[128,128], index: 12, kind: input, shape index: {}]   ;;  %s4966_s13 = inlined_call_operand.vmem [shape: bf16[128,256], index: 13, kind: input, shape index: {}]   ;;  %s4967_s14 = inlined_call_operand.vmem [shape: bf16[256,128], index: 14, kind: input, shape index: {}]   ;;  %s4968_s15 = inlined_call_operand.hbm [shape: f32[2,16,128], index: 15, kind: output, shape index: {}]  }
   0x1   :  { %5001 = sst [smem:[#allocation36_spill]] %s4954_s1 }
   0x2   :  { %5002 = sst [smem:[#allocation37_spill]] %s4955_s2 }
   0x3   :  { %5003 = sst [smem:[#allocation38_spill]] %s4957_s4 }
   0x4   :  { %5004 = sst [smem:[#allocation39_spill]] %s4959_s6 }
   0x5   :  { %5005 = sst [smem:[#allocation40_spill]] %s4960_s7 }
   0x6   :  { %5006 = sst [smem:[#allocation41_spill]] %s4962_s9 }
   0x7   :  { %5007 = sst [smem:[#allocation42_spill]] %s4963_s10 }
   0x8   :  { %5008 = sst [smem:[#allocation43_spill]] %s4964_s11 }
   0x9   :  { %5009 = sst [smem:[#allocation44_spill]] %s4966_s13 }
   0xa   :  { %5010 = sst [smem:[#allocation45_spill]] %s4967_s14 }
   0xb   :  { %5011 = sst [smem:[#allocation46_spill]] %s4968_s15 }
   0xc   :  { %20 = vsyncpa [#allocation4], 0 }
   0xd   :  { %22 = vsyncpa [#allocation4 + $0x1], 0 }
   0xe   :  { %23 = vsyncpa [#allocation7], 0 }
   0xf   :  { %25 = vsyncpa [#allocation7 + $0x1], 0 }
  0x10   :  { %26 = vsyncpa [#allocation10], 0 }
  0x11   :  { %28 = vsyncpa [#allocation10 + $0x1], 0 }
  0x12   :  { %29 = vsyncpa [#allocation13], 0 }
  0x13   :  { %30 = vsyncpa [#allocation16], 0 }
  0x14   :  { %31 = vsyncpa [#allocation5], 0 }
  0x15   :  { %33 = vsyncpa [#allocation5 + $0x1], 0  ;;  %s4088_s18 = smov 0   ;;  %s4090_s19 = smov 0  }
  0x16   :  { %s4092_s20 = smov 0   ;;  %s4094_s21 = smov 0  }
  0x17   :  { %s4096_s22 = smov 0   ;;  %s4098_s23 = smov 0  }
  0x18 LB: > { %5012 = sst [smem:[#allocation26_spill]] %s3964_s18  ;;  %s4119_s24 = sadd.s32 4294967295, %s3984_s23   ;;  %s3984_s23 = sphi %s4098_s23, %s39_s23   ;;  %s3980_s22 = sphi %s4096_s22, %s5074_s22   ;;  %s3976_s21 = sphi %s4094_s21, %s5073_s21   ;;  %s3972_s20 = sphi %s4092_s20, %s5071_s20   ;;  %s3968_s19 = sphi %s4090_s19, %s5070_s19   ;;  %s3964_s18 = sphi %s4088_s18, %s5069_s18  }
  0x19   : > { %5013 = sst [smem:[#allocation27_spill]] %s3968_s19  ;;  %s2916_s25 = sadd.s32 4294967294, %s3984_s23  }
  0x1a   : > { %5014 = sst [smem:[#allocation28_spill]] %s3972_s20  ;;  %p73_p0 = scmp.ne.s32.totalorder %s3968_s19, %s3964_s18 }
  0x1b   : > { %5015 = sst [smem:[#allocation29_spill]] %s3976_s21  ;;  %p4975_p1 = scmp.eq.s32.totalorder %s4119_s24, 0 }
  0x1c   : > { %5016 = sst [smem:[#allocation30_spill]] %s4119_s24  ;;  %p431_p3 = scmp.eq.s32.totalorder %s2916_s25, 1 }
  0x1d   : > { %p4128_p4 = por %p4975_p1, %p73_p0  ;;  %p2917_p5 = scmp.ge.s32.totalorder %s3984_s23, 1 }
  0x1e   : > { %p4133_p6 = por %p431_p3, %p73_p0  ;;  %p438_p7 = scmp.lt.s32.totalorder %s3984_s23, 3 }
  0x1f   : > { %s5017_s26 = scalar_select %p4128_p4, 1, 0 }
  0x20   : > { %s5019_s27 = scalar_select %p4133_p6, 1, 0 }
  0x21   : > { %5018 = sst [smem:[#allocation31_spill]] %s5017_s26  ;;  %p4138_p8 = pnand %p2917_p5, %p438_p7 }
  0x22   : > { %5020 = sst [smem:[#allocation32_spill]] %s5019_s27  ;;  %s3986_s29 = smov [#allocation11]  }
  0x23   : > { %s5021_s28 = scalar_select %p4138_p8, 1, 0 }
  0x24   : > { %s453_s30 = sshll.u32 %s3986_s29, 4  ;;  %p3349_p9 = pneg %p4138_p8  ;;  %s4142_s30 = int_to_ptr.vmem [resolvable:$true] %s453_s30 }
  0x25   : > { %s3987_s17 = smov [#allocation12]   ;;  %s3988_s27 = smov [#allocation15]  }
  0x26   : > { %p4149_p11 = pnand %p3349_p9, %p4975_p1  ;;  %s467_s25 = sshll.u32 %s3987_s17, 4  ;;  %s4153_s25 = int_to_ptr.vmem [resolvable:$true] %s467_s25 }
  0x27   : > { %s4155_s18 = sshll.u32 %s3988_s27, 4  ;;  %s5023_s6 = sld [smem:[#allocation39_spill]]  ;;  %s495_s18 = int_to_ptr.vmem [resolvable:$true] %s4155_s18 }
  0x28   : > { %s5022_s16 = scalar_select %p4149_p11, 1, 0 }
  0x29   : > { %p4165_p13 = pneg %p4149_p11 }
  0x2b   : > { %s5024_s10 = scalar_select %p4165_p13, 1, 0 }
  0x2d   : > { %s3622_s9 = scalar_lea.hbm %s5023_s6, 128 }
  0x2e   : > { %p3623_p12 = scmp.ne.s32.totalorder %s5023_s6, %s3622_s9  ;;  %p3629_p5 = scmp.lt.u32.totalorder %s3622_s9, %s5023_s6 }
  0x30   : > { %p3625_p0 = pnand %p4165_p13, %p3623_p12 }
  0x32   : > { %p3626_p3 = pneg %p3625_p0 }
  0x34   : > { %p3631_p7 = pnand %p3629_p5, %p3626_p3 }
  0x36   : > { %3634 = shalt.err (!%p3631_p7)
}
  0x37   : > { %s3635_s13 = scalar_lea.vmem %s4142_s30, 128  ;;  %p3643_p2 = scmp.lt.s32.totalorder %s4142_s30, %s4142_s30 }
  0x38   : > { %p3636_p9 = scmp.ne.s32.totalorder %s4142_s30, %s3635_s13  ;;  %p3644_p6 = scmp.lt.s32.totalorder %s3635_s13, %s3635_s13 }
  0x3a   : > { %p3638_p10 = pnand %p3636_p9, %p4165_p13  ;;  %p3645_p12 = por %p3644_p6, %p3643_p2 }
  0x3c   : > { %p3639_p1 = pneg %p3638_p10 }
  0x3e   : > { %p3646_p0 = pnand %p3645_p12, %p3639_p1 }
  0x40   : > { %3649 = shalt.err (!%p3646_p0)
}
  0x41   : > { %s4981_s14 = smov 64   ;;  %s4983_s9 = smov 4  }
  0x42   : > { %3352 = dma.hbm_to_vmem [thread:$0]  (!%p4149_p11), %s5023_s6, 128, %s4142_s30, [#allocation10], %s4981_s14, %s4981_s14, %s4983_s9  }
  0x43   : > { %s5025_s7 = sld [smem:[#allocation40_spill]] }
  0x49   : > { %s3650_s13 = scalar_lea.hbm %s5025_s7, 16 }
  0x4a   : > { %p3651_p1 = scmp.ne.s32.totalorder %s5025_s7, %s3650_s13  ;;  %p3657_p10 = scmp.lt.u32.totalorder %s3650_s13, %s5025_s7 }
  0x4c   : > { %p3653_p2 = pnand %p3651_p1, %p4165_p13 }
  0x4e   : > { %p3654_p6 = pneg %p3653_p2 }
  0x50   : > { %p3659_p3 = pnand %p3657_p10, %p3654_p6 }
  0x52   : > { %3662 = shalt.err (!%p3659_p3)
}
  0x53   : > { %s3663_s30 = scalar_lea.vmem %s4153_s25, 16  ;;  %s3670_s2 = scalar_lea.vmem %s4153_s25, 32 }
  0x54   : > { %p3664_p5 = scmp.ne.s32.totalorder %s4153_s25, %s3663_s30  ;;  %p3671_p12 = scmp.lt.s32.totalorder %s4153_s25, %s4153_s25 }
  0x55   : > { %p3672_p0 = scmp.lt.s32.totalorder %s3670_s2, %s3663_s30 }
  0x56   : > { %p3666_p7 = pnand %p3664_p5, %p4165_p13 }
  0x57   : > { %p3673_p1 = por %p3672_p0, %p3671_p12 }
  0x58   : > { %p3667_p9 = pneg %p3666_p7 }
  0x5a   : > { %p3674_p2 = pnand %p3673_p1, %p3667_p9 }
  0x5c   : > { %3677 = shalt.err (!%p3674_p2)
}
  0x5d   : > { %3355 = dma.hbm_to_vmem [thread:$0]  (!%p4149_p11), %s5025_s7, 16, %s4153_s25, [#allocation13]  }
  0x5e   : > { %s5026_s11 = sld [smem:[#allocation43_spill]] }
  0x64   : > { %s3678_s29 = scalar_lea.hbm %s5026_s11, 1024 }
  0x65   : > { %p3679_p6 = scmp.ne.s32.totalorder %s5026_s11, %s3678_s29  ;;  %p3685_p5 = scmp.lt.u32.totalorder %s3678_s29, %s5026_s11 }
  0x67   : > { %p3681_p10 = pnand %p3679_p6, %p4165_p13 }
  0x69   : > { %p3682_p3 = pneg %p3681_p10 }
  0x6b   : > { %p3687_p7 = pnand %p3685_p5, %p3682_p3 }
  0x6d   : > { %3690 = shalt.err (!%p3687_p7)
}
  0x6e   : > { %s3691_s2 = scalar_lea.vmem %s495_s18, 1024  ;;  %p3699_p1 = scmp.lt.s32.totalorder %s495_s18, %s495_s18 }
  0x6f   : > { %p3692_p9 = scmp.ne.s32.totalorder %s495_s18, %s3691_s2  ;;  %p3700_p2 = scmp.lt.s32.totalorder %s3691_s2, %s3691_s2 }
  0x71   : > { %p3694_p12 = pnand %p3692_p9, %p4165_p13  ;;  %p3701_p4 = por %p3700_p2, %p3699_p1 }
  0x73   : > { %p3695_p0 = pneg %p3694_p12 }
  0x75   : > { %p3702_p8 = pnand %p3701_p4, %p3695_p0 }
  0x77   : > { %3705 = shalt.err (!%p3702_p8)
}
  0x78   : > { %3361 = dma.hbm_to_vmem [thread:$0]  (!%p4149_p11), %s5026_s11, 1024, %s495_s18, [#allocation16], %s4981_s14, %s4981_s14, %s4983_s9  }
  0x79   : > { %s60_s21 = sadd.s32 1, %s3972_s20  ;;  %s51_s26 = sadd.s32 1, %s3980_s22 }
  0x7a   : > { %p67_p4 = scmp.ne.s32.totalorder %s3972_s20, %s3968_s19  ;;  %p53_p8 = scmp.ge.s32.totalorder %s51_s26, 2 }
  0x7b   : > { %p68_p6 = scmp.eq.s32.totalorder %s3984_s23, 0  ;;  %p5027_p10 = scmp.eq.s32.totalorder %s4119_s24, 1 }
  0x7c   : > { %p3387_p5 = scmp.lt.s32.totalorder %s3984_s23, 2  ;;  %s5076_s26 = smov (%p53_p8, %s51_s26), 0 }
  0x7d   : > { %p4242_p3 = por %p5027_p10, %p67_p4  ;;  %5030 = sst [smem:[#allocation34_spill]] %s5076_s26 }
  0x7e   : > { %p69_p7 = por %p68_p6, %p67_p4  ;;  %s4250_s29 = sand.u32 1, %s3972_s20  }
  0x7f   : > { %s5028_s15 = scalar_select %p4242_p3, 1, 0 }
  0x80   : > { %s55_s18 = ssub.s32 %s3980_s22, %s5076_s26  ;;  %p4255_p12 = pnand %p3387_p5, %p69_p7 }
  0x81   : > { %5029 = sst [smem:[#allocation33_spill]] %s5028_s15  ;;  %p58_p9 = scmp.eq.s32.totalorder %s55_s18, 0 }
  0x82   : > { %s5031_s27 = scalar_select %p4255_p12, 1, 0 }
  0x83   : > { %s4260_s13 = sshll.u32 %s4250_s29, 3  ;;  %s4266_s2 = sshll.u32 %s3980_s22, 7 }
  0x84   : > { %s4263_s30 = scalar_select %p58_p9, %s3972_s20, %s60_s21  }
  0x85   : > { %s554_s25 = scalar_lea.vmem [#allocation6], %s4260_s13  ;;  %s5033_s1 = sld [smem:[#allocation36_spill]] }
  0x86   : > { %5032 = sst [smem:[#allocation35_spill]] %s4263_s30  ;;  %s563_s4 = sshll.u32 %s554_s25, 4  ;;  %s4275_s4 = int_to_ptr.vmem [resolvable:$true] %s563_s4 }
  0x87   : > { %s5034_s18 = sand.u32 1, %s3984_s23   ;;  %p4285_p1 = pneg %p4255_p12 }
  0x88   : > { %s4279_s6 = scalar_lea.sflag [#allocation7], %s5034_s18 }
  0x89   : > { %s5035_s7 = scalar_select %p4285_p1, 1, 0 }
  0x8b   : > { %s4273_s17 = scalar_lea.hbm %s5033_s1, %s4266_s2  ;;  %s3711_s25 = scalar_lea.hbm %s5033_s1, 256 }
  0x8c   : > { %s3706_s21 = scalar_lea.hbm %s4273_s17, 128  ;;  %p3712_p8 = scmp.lt.u32.totalorder %s4273_s17, %s5033_s1 }
  0x8d   : > { %p3707_p0 = scmp.ne.s32.totalorder %s4273_s17, %s3706_s21  ;;  %p3713_p6 = scmp.lt.u32.totalorder %s3711_s25, %s3706_s21 }
  0x8e   : > { %p3715_p5 = scmp.lt.u32.totalorder %s3706_s21, %s4273_s17 }
  0x8f   : > { %p3709_p2 = pnand %p4285_p1, %p3707_p0  ;;  %p3714_p10 = por %p3713_p6, %p3712_p8 }
  0x91   : > { %p3710_p4 = pneg %p3709_p2  ;;  %p3716_p7 = por %p3715_p5, %p3714_p10 }
  0x93   : > { %p3717_p9 = pnand %p3716_p7, %p3710_p4 }
  0x95   : > { %3720 = shalt.err (!%p3717_p9)
}
  0x96   : > { %s3721_s18 = scalar_lea.vmem %s4275_s4, 128  ;;  %s3991_s14 = smov [#allocation6]  }
  0x97   : > { %p3722_p0 = scmp.ne.s32.totalorder %s4275_s4, %s3721_s18  ;;  %s3726_s9 = sshll.u32 %s3991_s14, 4  ;;  %s3727_s9 = int_to_ptr.vmem [resolvable:$false] %s3726_s9 }
  0x98   : > { %s3728_s11 = scalar_lea.vmem %s3727_s9, 256  ;;  %p3729_p11 = scmp.lt.s32.totalorder %s4275_s4, %s3727_s9 }
  0x99   : > { %p3724_p2 = pnand %p3722_p0, %p4285_p1  ;;  %p3730_p13 = scmp.lt.s32.totalorder %s3728_s11, %s3721_s18 }
  0x9b   : > { %p3725_p3 = pneg %p3724_p2  ;;  %p3731_p8 = por %p3730_p13, %p3729_p11 }
  0x9d   : > { %p3732_p6 = pnand %p3731_p8, %p3725_p3 }
  0x9f   : > { %3735 = shalt.err (!%p3732_p6)
}
  0xa0   : > { %s5036_s26 = smov 4   ;;  %s5037_s21 = smov 64  }
  0xa1   : > { %3371 = dma.hbm_to_vmem [thread:$0]  (!%p4255_p12), %s4273_s17, 128, %s4275_s4, %s4279_s6, %s5037_s21, %s5037_s21, %s5036_s26  }
  0xa2   : > { %s3992_s25 = smov [#allocation14]   ;;  %s3993_s14 = smov [#allocation17]  }
  0xa3   : > { %s478_s1 = sshll.u32 %s3992_s25, 4  ;;  %s507_s30 = sshll.u32 %s3993_s14, 4  ;;  %s479_s1 = int_to_ptr.vmem [resolvable:$true] %s478_s1  ;;  %s508_s30 = int_to_ptr.vmem [resolvable:$true] %s507_s30 }
  0xa4   : > { %s3736_s11 = scalar_lea.hbm %s4961_s8, 128  ;;  %p5038_p13 = scmp.ne.s32.totalorder %s5024_s10, 0 }
  0xa5   : > { %p3737_p11 = scmp.ne.s32.totalorder %s4961_s8, %s3736_s11  ;;  %p3743_p10 = scmp.lt.u32.totalorder %s3736_s11, %s4961_s8 }
  0xa7   : > { %p3739_p3 = pnand %p3737_p11, %p5038_p13 }
  0xa9   : > { %p3740_p4 = pneg %p3739_p3 }
  0xab   : > { %p3745_p5 = pnand %p3743_p10, %p3740_p4 }
  0xad   : > { %3748 = shalt.err (!%p3745_p5)
}
  0xae   : > { %s3749_s17 = scalar_lea.vmem %s479_s1, 128  ;;  %p3757_p2 = scmp.lt.s32.totalorder %s479_s1, %s479_s1 }
  0xaf   : > { %p3750_p7 = scmp.ne.s32.totalorder %s479_s1, %s3749_s17  ;;  %p3758_p8 = scmp.lt.s32.totalorder %s3749_s17, %s3749_s17 }
  0xb1   : > { %p3752_p9 = pnand %p3750_p7, %p5038_p13  ;;  %p3759_p6 = por %p3758_p8, %p3757_p2 }
  0xb3   : > { %p3753_p0 = pneg %p3752_p9 }
  0xb5   : > { %p3760_p12 = pnand %p3759_p6, %p3753_p0 }
  0xb7   : > { %3763 = shalt.err (!%p3760_p12)
}
  0xb8   : > { %p5039_p11 = scmp.ne.s32.totalorder %s5022_s16, 0  ;;  %s3764_s4 = scalar_lea.hbm %s4965_s12, 1024 }
  0xb9   : > { %p3765_p3 = scmp.ne.s32.totalorder %s4965_s12, %s3764_s4  ;;  %p3771_p12 = scmp.lt.u32.totalorder %s3764_s4, %s4965_s12 }
  0xba   : > { %3358 = dma.hbm_to_vmem [thread:$0]  (!%p5039_p11), %s4961_s8, 128, %s479_s1, [#allocation13]  }
  0xbb   : > { %p3767_p4 = pnand %p3765_p3, %p5038_p13 }
  0xbd   : > { %p3768_p10 = pneg %p3767_p4 }
  0xbf   : > { %p3773_p5 = pnand %p3771_p12, %p3768_p10 }
  0xc1   : > { %3776 = shalt.err (!%p3773_p5)
}
  0xc2   : > { %s3777_s11 = scalar_lea.vmem %s508_s30, 1024  ;;  %p3785_p2 = scmp.lt.s32.totalorder %s508_s30, %s508_s30 }
  0xc3   : > { %p3778_p7 = scmp.ne.s32.totalorder %s508_s30, %s3777_s11  ;;  %p3786_p8 = scmp.lt.s32.totalorder %s3777_s11, %s3777_s11 }
  0xc5   : > { %p3780_p9 = pnand %p3778_p7, %p5038_p13  ;;  %p3787_p6 = por %p3786_p8, %p3785_p2 }
  0xc7   : > { %p3781_p0 = pneg %p3780_p9 }
  0xc9   : > { %p3788_p1 = pnand %p3787_p6, %p3781_p0 }
  0xcb   : > { %3791 = shalt.err (!%p3788_p1)
}
  0xcc   : > { %3364 = dma.hbm_to_vmem [thread:$0]  (!%p5039_p11), %s4965_s12, 1024, %s508_s30, [#allocation16], %s5037_s21, %s5037_s21, %s5036_s26  }
  0xcd   : > { %s2924_s10 = sshll.u32 %s4250_s29, 4  ;;  %s3047_s20 = sshll.u32 %s3980_s22, 8 }
  0xce   : > { %s4356_s24 = scalar_lea.hbm %s4953_s0, %s3047_s20  ;;  %s531_s16 = scalar_lea.vmem [#allocation3], %s2924_s10 }
  0xcf   : > { %s540_s4 = sshll.u32 %s531_s16, 4  ;;  %s528_s25 = scalar_lea.sflag [#allocation4], %s4250_s29  ;;  %s4358_s4 = int_to_ptr.vmem [resolvable:$true] %s540_s4 }
  0xd0   : > { %s3792_s14 = scalar_lea.hbm %s4356_s24, 256  ;;  %p5040_p13 = scmp.ne.s32.totalorder %s5035_s7, 0 }
  0xd1   : > { %p3793_p1 = scmp.ne.s32.totalorder %s4356_s24, %s3792_s14  ;;  %s3797_s18 = scalar_lea.hbm %s4953_s0, 512 }
  0xd2   : > { %p3798_p4 = scmp.lt.u32.totalorder %s4356_s24, %s4953_s0  ;;  %p3799_p10 = scmp.lt.u32.totalorder %s3797_s18, %s3792_s14 }
  0xd3   : > { %p3795_p11 = pnand %p3793_p1, %p5040_p13  ;;  %p3801_p5 = scmp.lt.u32.totalorder %s3792_s14, %s4356_s24 }
  0xd4   : > { %p3800_p12 = por %p3799_p10, %p3798_p4 }
  0xd5   : > { %p3796_p3 = pneg %p3795_p11 }
  0xd6   : > { %p3802_p7 = por %p3801_p5, %p3800_p12 }
  0xd8   : > { %p3803_p9 = pnand %p3802_p7, %p3796_p3 }
  0xda   : > { %3806 = shalt.err (!%p3803_p9)
}
  0xdb   : > { %s3807_s17 = scalar_lea.vmem %s4358_s4, 256  ;;  %s3994_s10 = smov [#allocation3]  }
  0xdc   : > { %p3808_p0 = scmp.ne.s32.totalorder %s4358_s4, %s3807_s17  ;;  %s3812_s20 = sshll.u32 %s3994_s10, 4  ;;  %s3813_s20 = int_to_ptr.vmem [resolvable:$false] %s3812_s20 }
  0xdd   : > { %s3814_s15 = scalar_lea.vmem %s3813_s20, 512  ;;  %p3815_p6 = scmp.lt.s32.totalorder %s4358_s4, %s3813_s20 }
  0xde   : > { %p3810_p2 = pnand %p3808_p0, %p5040_p13  ;;  %p3816_p1 = scmp.lt.s32.totalorder %s3814_s15, %s3807_s17 }
  0xe0   : > { %p3811_p8 = pneg %p3810_p2  ;;  %p3817_p11 = por %p3816_p1, %p3815_p6 }
  0xe2   : > { %p3818_p4 = pnand %p3817_p11, %p3811_p8 }
  0xe4   : > { %3821 = shalt.err (!%p3818_p4)
}
  0xe5   : > { %s3995_s19 = smov 128   ;;  %s3996_s16 = smov 8  }
  0xe6   : > { %p5041_p3 = scmp.ne.s32.totalorder %s5031_s27, 0  ;;  %s4388_s9 = scalar_lea.hbm %s4956_s3, %s4266_s2 }
  0xe7   : > { %s585_s18 = scalar_lea.vmem [#allocation8], %s4260_s13  ;;  %s4397_s10 = scalar_lea.hbm %s4958_s5, %s4266_s2 }
  0xe8   : > { %3368 = dma.hbm_to_vmem [thread:$0]  (!%p5041_p3), %s4356_s24, 256, %s4358_s4, %s528_s25, %s3995_s19, %s3995_s19, %s3996_s16  }
  0xe9   : > { %s592_s11 = sshll.u32 %s585_s18, 4  ;;  %s3822_s29 = scalar_lea.hbm %s4388_s9, 128  ;;  %s4391_s11 = int_to_ptr.vmem [resolvable:$true] %s592_s11 }
  0xea   : > { %p3823_p10 = scmp.ne.s32.totalorder %s4388_s9, %s3822_s29  ;;  %s3827_s25 = scalar_lea.hbm %s4956_s3, 256 }
  0xeb   : > { %p3828_p7 = scmp.lt.u32.totalorder %s4388_s9, %s4956_s3  ;;  %p3829_p9 = scmp.lt.u32.totalorder %s3827_s25, %s3822_s29 }
  0xec   : > { %p3825_p12 = pnand %p3823_p10, %p5040_p13  ;;  %p3831_p2 = scmp.lt.u32.totalorder %s3822_s29, %s4388_s9 }
  0xed   : > { %p3830_p0 = por %p3829_p9, %p3828_p7 }
  0xee   : > { %p3826_p5 = pneg %p3825_p12 }
  0xef   : > { %p3832_p8 = por %p3831_p2, %p3830_p0 }
  0xf1   : > { %p3833_p6 = pnand %p3832_p8, %p3826_p5 }
  0xf3   : > { %3836 = shalt.err (!%p3833_p6)
}
  0xf4   : > { %s3837_s2 = scalar_lea.vmem %s4391_s11, 128  ;;  %s3997_s19 = smov [#allocation8]  }
  0xf5   : > { %p3838_p1 = scmp.ne.s32.totalorder %s4391_s11, %s3837_s2  ;;  %s3842_s16 = sshll.u32 %s3997_s19, 4  ;;  %s3843_s16 = int_to_ptr.vmem [resolvable:$false] %s3842_s16 }
  0xf6   : > { %s3844_s14 = scalar_lea.vmem %s3843_s16, 256  ;;  %p3845_p10 = scmp.lt.s32.totalorder %s4391_s11, %s3843_s16 }
  0xf7   : > { %p3840_p11 = pnand %p3838_p1, %p5040_p13  ;;  %p3846_p12 = scmp.lt.s32.totalorder %s3844_s14, %s3837_s2 }
  0xf9   : > { %p3841_p4 = pneg %p3840_p11  ;;  %p3847_p7 = por %p3846_p12, %p3845_p10 }
  0xfb   : > { %p3848_p9 = pnand %p3847_p7, %p3841_p4 }
  0xfd   : > { %3851 = shalt.err (!%p3848_p9)
}
  0xfe   : > { %3374 = dma.hbm_to_vmem [thread:$0]  (!%p5041_p3), %s4388_s9, 128, %s4391_s11, %s4279_s6, %s5037_s21, %s5037_s21, %s5036_s26  }
  0xff   : > { %s614_s30 = scalar_lea.vmem [#allocation9], %s4260_s13  ;;  %s5042_s1 = sand.u32 1, %s3984_s23  }
 0x100   : > { %s621_s18 = sshll.u32 %s614_s30, 4  ;;  %s4429_s17 = scalar_lea.sflag [#allocation10], %s5042_s1  ;;  %s4425_s18 = int_to_ptr.vmem [resolvable:$true] %s621_s18 }
 0x101   : > { %s3852_s29 = scalar_lea.hbm %s4397_s10, 128  ;;  %s3857_s25 = scalar_lea.hbm %s4958_s5, 256 }
 0x102   : > { %p3853_p5 = scmp.ne.s32.totalorder %s4397_s10, %s3852_s29  ;;  %p3858_p8 = scmp.lt.u32.totalorder %s4397_s10, %s4958_s5 }
 0x103   : > { %p3859_p6 = scmp.lt.u32.totalorder %s3857_s25, %s3852_s29  ;;  %p3861_p11 = scmp.lt.u32.totalorder %s3852_s29, %s4397_s10 }
 0x104   : > { %p3855_p0 = pnand %p3853_p5, %p5040_p13 }
 0x105   : > { %p3860_p1 = por %p3859_p6, %p3858_p8 }
 0x106   : > { %p3856_p2 = pneg %p3855_p0 }
 0x107   : > { %p3862_p4 = por %p3861_p11, %p3860_p1 }
 0x109   : > { %p3863_p10 = pnand %p3862_p4, %p3856_p2 }
 0x10b   : > { %3866 = shalt.err (!%p3863_p10)
}
 0x10c   : > { %s3867_s6 = scalar_lea.vmem %s4425_s18, 128  ;;  %s3998_s13 = smov [#allocation9]  }
 0x10d   : > { %p3868_p12 = scmp.ne.s32.totalorder %s4425_s18, %s3867_s6  ;;  %s3872_s9 = sshll.u32 %s3998_s13, 4  ;;  %s3873_s9 = int_to_ptr.vmem [resolvable:$false] %s3872_s9 }
 0x10e   : > { %s3874_s11 = scalar_lea.vmem %s3873_s9, 256  ;;  %p3875_p5 = scmp.lt.s32.totalorder %s4425_s18, %s3873_s9 }
 0x10f   : > { %p3870_p7 = pnand %p3868_p12, %p5040_p13  ;;  %p3876_p0 = scmp.lt.s32.totalorder %s3874_s11, %s3867_s6 }
 0x111   : > { %p3871_p9 = pneg %p3870_p7  ;;  %p3877_p8 = por %p3876_p0, %p3875_p5 }
 0x113   : > { %p3878_p6 = pnand %p3877_p8, %p3871_p9 }
 0x115   : > { %3881 = shalt.err (!%p3878_p6)
}
 0x116   : > { %3377 = dma.hbm_to_vmem [thread:$0]  (!%p5041_p3), %s4397_s10, 128, %s4425_s18, %s4429_s17, %s5037_s21, %s5037_s21, %s5036_s26  }
 0x117   : > { %p5043_p13 = scmp.ne.s32.totalorder %s5021_s28, 0 }
 0x118   : > { %s5044_s7 = sld [smem:[#allocation27_spill]] (!%p5043_p13)  ;;  %s5045_s2 = sld [smem:[#allocation31_spill]] (!%p5043_p13) }
 0x119   : > { %633 = sbr.rel (%p5043_p13) target bundleno = 4589 (0x11ed), region = 80 }
 0x11e   : > { %s4459_s19 = sand.u32 (!%p5043_p13), 1, %s5044_s7   ;;  %p5046_p2 = scmp.ne.s32.totalorder (!%p5043_p13), %s5045_s2, 0 }
 0x11f   : > { %s2937_s16 = sshll.u32 (!%p5043_p13), %s4459_s19, 4  ;;  %s636_s14 = scalar_lea.sflag (!%p5043_p13), [#allocation4], %s4459_s19 }
 0x120   : > { %s4465_s27 = scalar_lea.vmem [#allocation3], %s2937_s16 }
 0x121   : > { %3935 = dma.done.wait (%p5046_p2), %s636_s14, 256  }
 0x122   : > { %3937 = vsyncadd (%p5046_p2), %s636_s14, 4294967040  ;;  %s5047_s26 = sld [smem:[#allocation30_spill]]  ;;  %s4473_s21 = sshll.u32 %s4459_s19, 3 }
 0x123   : > { %s648_s30 = scalar_lea.vmem [#allocation6], %s4473_s21 }
 0x128   : > { %s644_s28 = sand.u32 1, %s5047_s26  }
 0x129   : > { %s645_s10 = scalar_lea.sflag [#allocation7], %s644_s28 }
 0x12a   : > { %3939 = dma.done.wait (%p5046_p2), %s645_s10, 256  }
 0x12b   : > { %3941 = vsyncadd (%p5046_p2), %s645_s10, 4294967040  ;;  %s657_s18 = scalar_lea.vmem [#allocation8], %s4473_s21  ;;  %s663_s1 = scalar_lea.sflag [#allocation10], %s644_s28 }
 0x12c   : > { %s666_s17 = scalar_lea.vmem [#allocation9], %s4473_s21 }
 0x12d   : > { %3943 = dma.done.wait (%p5046_p2), %s663_s1, 128  }
 0x12e   : > { %3945 = vsyncadd (%p5046_p2), %s663_s1, 4294967168  ;;  %p5048_p3 = scmp.eq.s32.totalorder %s5047_s26, 0 }
 0x130   : > { %3947 = dma.done.wait (%p5048_p3), [#allocation10], 128   ;;  %p5049_p1 = pmov %p5048_p3 }
 0x132   : > { %3949 = vsyncadd (%p5049_p1), [#allocation10], 4294967168  ;;  %p5050_p11 = pmov %p5049_p1 }
 0x133   : > { %p5051_p4 = pmov %p5049_p1 }
 0x134   : > { %3951 = dma.done.wait (%p5050_p11), [#allocation13], 144  }
 0x135   : > { %3953 = vsyncadd (%p5051_p4), [#allocation13], 4294967152  ;;  %p5052_p10 = pmov %p5049_p1 }
 0x136   : > { %p5053_p12 = pmov %p5049_p1 }
 0x137   : > { %3955 = dma.done.wait (%p5052_p10), [#allocation16], 2048  }
 0x138   : > { %3957 = vsyncadd (%p5053_p12), [#allocation16], 4294965248  ;;  %s5054_s29 = sld [smem:[#allocation29_spill]]  ;;  %v3999_v0 = vmov 0.0   ;;  %vm4000_vm0 = vmmov 0   ;;  %s5055_s15 = sld [smem:[#allocation37_spill]] }
 0x139   : > { %3147 = vmatprep.subr.bf16.mxu0 %v3999_v0  ;;  %3151 = vmatprep.mubr.msk.bf16.mxu0 %vm4000_vm0, %v3999_v0  ;;  %v3461_v3 = vld [vmem:[%s648_s30] sm:$0xff]   ;;  %vm838_vm1 = vcmask 261120   ;;  %s5056_s11 = sld [smem:[#allocation38_spill]]  ;;  %v3055_v4 = vld [vmem:[#allocation11] sm:$0xff]   ;;  %vm883_vm2 = vcmask 130048   ;;  %s4001_s2 = smov 96  }
 0x13a   : > { %3175 = vmatprep.subr.bf16.mxu1 %v3999_v0  ;;  %3179 = vmatprep.mubr.msk.bf16.mxu1 %vm4000_vm0, %v3999_v0  ;;  %v4523_v5 = vunpack.c.l.bf16 %v3055_v4  ;;  %v4525_v6 = vunpack.c.h.bf16 %v3055_v4  ;;  %s4002_s14 = smov 64   ;;  %s4003_s26 = smov 32   ;;  %v4538_v25 = vld [vmem:[%s657_s18] sm:$0xff]   ;;  %vm1092_vm3 = vcmask 523520   ;;  %vm1227_vm4 = vcmask 785920  }
 0x13b   : > { %vm1362_vm5 = vcmask 1048320   ;;  %s5057_s10 = sld [smem:[#allocation42_spill]]  ;;  %s5059_s9 = sld [smem:[#allocation45_spill]] }
 0x13c   : > { %s5060_s20 = sld [smem:[#allocation41_spill]]  ;;  %s5062_s21 = sld [smem:[#allocation46_spill]] }
 0x13e   : > { %p760_p7 = scmp.lt.s32.totalorder %s5054_s29, 1 }
 0x140   : > { %s761_s24 = scalar_select %p760_p7, %s5054_s29, 1 }
 0x142   : > { %s3051_s4 = sshll.u32 %s761_s24, 6 }
 0x143   : > { %s4509_s6 = scalar_lea.vmem %s5055_s15, %s3051_s4  ;;  %s4521_s7 = scalar_lea.vmem %s5056_s11, %s3051_s4 }
 0x144   : > { %v3459_v1 = vld [vmem:[%s4509_s6] sm:$0xff]   ;;  %v3460_v2 = vld [vmem:[%s4509_s6 + $0x8] sm:$0xff]   ;;  %v3467_v30 = vld [vmem:[%s4509_s6 + $0x30] sm:$0xff]   ;;  %s757_s15 = scalar_lea.vmem [#allocation18], %s2937_s16  ;;  %s3053_s11 = sshll.u32 %s5054_s29, 8 }
 0x145   : > { %3148 = vmatpush3.bf16.msra.mxu0 %v3459_v1  ;;  %v3463_v26 = vld [vmem:[%s4509_s6 + $0x20] sm:$0xff]   ;;  %v3465_v27 = vld [vmem:[%s4509_s6 + $0x28] sm:$0xff]   ;;  %v3468_v32 = vld [vmem:[%s4509_s6 + $0x38] sm:$0xff]   ;;  %s2686_s13 = sshll.u32 %s757_s15, 4  ;;  %s2671_s16 = scalar_lea.sflag [#allocation5], %s4459_s19  ;;  %s4898_s13 = int_to_ptr.vmem [resolvable:$true] %s2686_s13 }
 0x146   : > { %3149 = vmatprep.subr.bf16.mxu0 %v3999_v0  ;;  %3176 = vmatpush3.bf16.msra.mxu1 %v3463_v26  ;;  %v3464_v38 = vld [vmem:[%s4509_s6 + $0x10] sm:$0xff]   ;;  %v3466_v40 = vld [vmem:[%s4509_s6 + $0x18] sm:$0xff]   ;;  %s5061_s6 = sld [smem:[#allocation33_spill]]  ;;  %s4005_s29 = smov [#allocation18]  }
 0x147   : > { %3177 = vmatprep.subr.bf16.mxu1 %v3999_v0 }
 0x149   : > { %3150 = vmatpush3.bf16.msra.mxu0 %v3460_v2 }
 0x14a   : > { %3155 = vmatprep.subr.bf16.mxu0 %v3999_v0  ;;  %3178 = vmatpush3.bf16.msra.mxu1 %v3465_v27 }
 0x14b   : > { %3189 = vmatprep.subr.bf16.mxu1 %v3999_v0 }
 0x14c   : > { %3152 = vmatmul.mubr.msk.bf16.vlgmr.msra.gmra.mrb[0].mxu0 %vm838_vm1, %v3461_v3  ;;  %p5064_p5 = scmp.ne.s32.totalorder %s5061_s6, 0 }
 0x14d   : > { %3157 = vmatprep.mubr.msk.bf16.mxu0 %vm4000_vm0, %v3999_v0  ;;  %3156 = vmatpush3.bf16.msra.mxu0 %v4538_v25 }
 0x14e   : > { %3161 = vmatprep.subr.bf16.mxu0 %v3999_v0 }
 0x21f   : > { %v876_v7 = vpop.f32.mrb[0].mxu0 }
 0x220   : > { %v877_v8 = vadd.f32 %v4523_v5, %v876_v7  ;;  %v3153_v9 = vpop.f32.mrb[1].mxu0 }
 0x221   : > { %v879_v10 = vpop.f32.mrb[2].mxu0 }
 0x222   : > { %v880_v11 = vadd.f32 %v4525_v6, %v879_v10  ;;  %v3154_v12 = vpop.f32.mrb[3].mxu0  ;;  %v884_v13 = vsel %vm883_vm2, %v877_v8, -inf }
 0x223   : > { %885 = vmax.xlane.f32.xlu0 %v884_v13 }
 0x224   : > { %v887_v14 = vsel %vm883_vm2, %v880_v11, -inf }
 0x227   : > { %888 = vmax.xlane.f32.xlu0 %v887_v14 }
 0x23d   : > { %959 = vrot.lane.b32.xlu0 %v3461_v3, %s4001_s2 }
 0x2b0   : > { %v886_v15 = vpop.xlane.xlu0 %885 }
 0x2b1   : > { %v890_v16 = vsub.f32 %v877_v8, %v886_v15 }
 0x2b3   : > { %v892_v17 = vmul.f32 1.442695, %v890_v16 }
 0x2b4   : > { %v889_v18 = vpop.xlane.xlu0 %888 }
 0x2b5   : > { %3542 = vpow2.f32 %v892_v17  ;;  %v891_v19 = vsub.f32 %v880_v11, %v889_v18 }
 0x2b7   : > { %v894_v20 = vmul.f32 1.442695, %v891_v19 }
 0x2b8   : > { %v960_v41 = vpop.permute.xlu0 %959 }
 0x2b9   : > { %3544 = vpow2.f32 %v894_v20 }
 0x2bf   : > { %v3543_v21 = vpop.eup %3542 }
 0x2c0   : > { %v896_v22 = vsel %vm883_vm2, %v3543_v21, 0.0 }
 0x2c1   : > { %897 = vadd.xlane.f32.xlu1 %v896_v22 }
 0x2c3   : > { %v3545_v23 = vpop.eup %3544 }
 0x2c4   : > { %v899_v24 = vsel %vm883_vm2, %v3545_v23, 0.0 }
 0x2c5   : > { %900 = vadd.xlane.f32.xlu1 %v899_v24 }
 0x2d6   : > { %1094 = vrot.lane.b32.xlu1 %v3461_v3, %s4002_s14 }
 0x2da   : > { %1229 = vrot.lane.b32.xlu1 %v3461_v3, %s4003_s26 }
 0x34e   : > { %v898_v28 = vpop.xlane.xlu1 %897 }
 0x34f   : > { %3546 = vrcp.f32 %v898_v28 }
 0x352   : > { %v901_v29 = vpop.xlane.xlu1 %900 }
 0x353   : > { %3548 = vrcp.f32 %v901_v29 }
 0x356   : > { %v1095_v31 = vpop.permute.xlu1 %1094 }
 0x357   : > { %3180 = vmatmul.mubr.msk.bf16.vlgmr.msra.gmra.mrb[0].mxu1 %vm838_vm1, %v1095_v31 }
 0x358   : > { %3190 = vmatpush3.bf16.msra.mxu1 %v3467_v30  ;;  %3193 = vmatprep.mubr.msk.bf16.mxu1 %vm4000_vm0, %v3999_v0 }
 0x359   : > { %3191 = vmatprep.subr.bf16.mxu1 %v3999_v0  ;;  %v3547_v33 = vpop.eup %3546 }
 0x35a   : > { %v1230_v34 = vpop.permute.xlu1 %1229  ;;  %v904_v36 = vmul.f32 %v3547_v33, %v3543_v21 }
 0x35c   : > { %3192 = vmatpush3.bf16.msra.mxu1 %v3468_v32 }
 0x35d   : > { %v3549_v35 = vpop.eup %3548  ;;  %3203 = vmatprep.subr.bf16.mxu1 %v3999_v0 }
 0x35e   : > { %v905_v37 = vmul.f32 %v3549_v35, %v3545_v23 }
 0x35f   : > { %3194 = vmatmul.mubr.msk.bf16.vlgmr.msra.gmra.mrb[4].mxu1 %vm838_vm1, %v1230_v34 }
 0x360   : > { %v906_v39 = vpack.c.bf16 %v905_v37, %v904_v36  ;;  %3219 = vmatprep.mubr.msk.bf16.mxu1 %vm4000_vm0, %v3999_v0 }
 0x362   : > { %3158 = vmatmul.mubr.msk.bf16.vlgmr.msra.gmra.mrb[4].mxu0 %vm883_vm2, %v906_v39 }
 0x363   : > { %3162 = vmatpush3.bf16.msra.mxu0 %v3464_v38  ;;  %3165 = vmatprep.mubr.msk.bf16.mxu0 %vm4000_vm0, %v3999_v0 }
 0x364   : > { %3163 = vmatprep.subr.bf16.mxu0 %v3999_v0 }
 0x367   : > { %3164 = vmatpush3.bf16.msra.mxu0 %v3466_v40 }
 0x368   : > { %3169 = vmatprep.subr.bf16.mxu0 %v3999_v0 }
 0x36a   : > { %3166 = vmatmul.mubr.msk.bf16.vlgmr.msra.gmra.mrb[8].mxu0 %vm838_vm1, %v960_v41 }
 0x36b   : > { %3171 = vmatprep.mubr.msk.bf16.mxu0 %vm4000_vm0, %v3999_v0 }
 0x42a   : > { %v1145_v42 = vpop.f32.mrb[0].mxu1 }
 0x42b   : > { %v3181_v43 = vpop.f32.mrb[1].mxu1  ;;  %v1146_v63 = vadd.f32 %v4523_v5, %v1145_v42 }
 0x42c   : > { %v1148_v44 = vpop.f32.mrb[2].mxu1 }
 0x42d   : > { %v3182_v45 = vpop.f32.mrb[3].mxu1  ;;  %v1149_v3 = vadd.f32 %v4525_v6, %v1148_v44  ;;  %v1152_v4 = vsel %vm883_vm2, %v1146_v63, -inf }
 0x42f   : > { %v1155_v8 = vsel %vm883_vm2, %v1149_v3, -inf }
 0x432   : > { %v1280_v46 = vpop.f32.mrb[4].mxu1 }
 0x433   : > { %v3195_v47 = vpop.f32.mrb[5].mxu1  ;;  %v1281_v58 = vadd.f32 %v4523_v5, %v1280_v46 }
 0x434   : > { %v1283_v48 = vpop.f32.mrb[6].mxu1 }
 0x435   : > { %v950_v49 = vpop.f32.mrb[4].mxu0  ;;  %v3196_v50 = vpop.f32.mrb[7].mxu1  ;;  %v1287_v2 = vsel %vm883_vm2, %v1281_v58, -inf  ;;  %v1284_v7 = vadd.f32 %v4525_v6, %v1283_v48 }
 0x436   : > { %v3159_v51 = vpop.f32.mrb[5].mxu0 }
 0x437   : > { %v953_v52 = vpop.f32.mrb[6].mxu0  ;;  %v1290_v9 = vsel %vm883_vm2, %v1284_v7, -inf }
 0x438   : > { %v957_v53 = vpack.c.bf16 %v953_v52, %v950_v49  ;;  %v3160_v54 = vpop.f32.mrb[7].mxu0 }
 0x43a   : > { %958 = vst.msk [vmem:[#allocation2] sm:$0xff] %vm838_vm1, %v957_v53 }
 0x43d   : > { %v1010_v55 = vpop.f32.mrb[8].mxu0 }
 0x43e   : > { %v1011_v56 = vadd.f32 %v4523_v5, %v1010_v55  ;;  %v3167_v57 = vpop.f32.mrb[9].mxu0 }
 0x43f   : > { %v1013_v59 = vpop.f32.mrb[10].mxu0 }
 0x440   : > { %v1014_v60 = vadd.f32 %v4525_v6, %v1013_v59  ;;  %v3168_v61 = vpop.f32.mrb[11].mxu0  ;;  %v1017_v62 = vsel %vm883_vm2, %v1011_v56, -inf }
 0x441   : > { %1018 = vmax.xlane.f32.xlu1 %v1017_v62  ;;  %v3469_v62 = vld [vmem:[#allocation15] sm:$0xff]  }
 0x442   : > { %v1020_v1 = vsel %vm883_vm2, %v1014_v60, -inf  ;;  %3204 = vmatpush3.bf16.msra.mxu1 %v3469_v62 }
 0x443   : > { %1021 = vmax.xlane.f32.xlu0 %v1020_v1  ;;  %3205 = vmatprep.subr.bf16.mxu1 %v3999_v0  ;;  %v3471_v1 = vld [vmem:[#allocation15 + $0x10] sm:$0xff]  }
 0x445   : > { %1288 = vmax.xlane.f32.xlu1 %v1287_v2  ;;  %v3472_v2 = vld [vmem:[#allocation15 + $0x18] sm:$0xff]  }
 0x447   : > { %1153 = vmax.xlane.f32.xlu0 %v1152_v4 }
 0x44b   : > { %1156 = vmax.xlane.f32.xlu0 %v1155_v8  ;;  %v3474_v8 = vld [vmem:[#allocation15 + $0x28] sm:$0xff]  }
 0x44f   : > { %1291 = vmax.xlane.f32.xlu0 %v1290_v9 }
 0x4ce   : > { %v1019_v5 = vpop.xlane.xlu1 %1018 }
 0x4cf   : > { %v1023_v15 = vsub.f32 %v1011_v56, %v1019_v5 }
 0x4d0   : > { %v1022_v10 = vpop.xlane.xlu0 %1021 }
 0x4d1   : > { %v1024_v16 = vsub.f32 %v1014_v60, %v1022_v10  ;;  %v1025_v6 = vmul.f32 1.442695, %v1023_v15 }
 0x4d2   : > { %v1289_v11 = vpop.xlane.xlu1 %1288 }
 0x4d3   : > { %v1293_v12 = vsub.f32 %v1281_v58, %v1289_v11  ;;  %v1027_v21 = vmul.f32 1.442695, %v1024_v16  ;;  %v3475_v11 = vld [vmem:[#allocation15 + $0x30] sm:$0xff]  }
 0x4d4   : > { %v1154_v13 = vpop.xlane.xlu0 %1153 }
 0x4d5   : > { %v1158_v14 = vsub.f32 %v1146_v63, %v1154_v13  ;;  %v1295_v17 = vmul.f32 1.442695, %v1293_v12  ;;  %v3470_v63 = vld [vmem:[#allocation15 + $0x8] sm:$0xff]  }
 0x4d6   : > { %3206 = vmatpush3.bf16.msra.mxu1 %v3470_v63 }
 0x4d7   : > { %v1160_v18 = vmul.f32 1.442695, %v1158_v14  ;;  %3207 = vmatprep.subr.bf16.mxu1 %v3999_v0  ;;  %v3476_v14 = vld [vmem:[#allocation15 + $0x38] sm:$0xff]  }
 0x4d8   : > { %v1157_v19 = vpop.xlane.xlu0 %1156 }
 0x4d9   : > { %3550 = vpow2.f32 %v1160_v18  ;;  %v1159_v20 = vsub.f32 %v1149_v3, %v1157_v19  ;;  %v3473_v3 = vld [vmem:[#allocation15 + $0x20] sm:$0xff]  }
 0x4da   : > { %3552 = vpow2.f32 %v1295_v17  ;;  %3208 = vmatpush3.bf16.msra.mxu1 %v3471_v1 }
 0x4db   : > { %v1162_v22 = vmul.f32 1.442695, %v1159_v20  ;;  %3209 = vmatprep.subr.bf16.mxu1 %v3999_v0 }
 0x4dc   : > { %v1292_v23 = vpop.xlane.xlu0 %1291 }
 0x4dd   : > { %3554 = vpow2.f32 %v1162_v22  ;;  %v1294_v24 = vsub.f32 %v1284_v7, %v1292_v23 }
 0x4de   : > { %3556 = vpow2.f32 %v1025_v6  ;;  %3210 = vmatpush3.bf16.msra.mxu1 %v3472_v2 }
 0x4df   : > { %3558 = vpow2.f32 %v1027_v21  ;;  %v1297_v26 = vmul.f32 1.442695, %v1294_v24  ;;  %3211 = vmatprep.subr.bf16.mxu1 %v3999_v0 }
 0x4e1   : > { %3560 = vpow2.f32 %v1297_v26 }
 0x4e2   : > { %3212 = vmatpush3.bf16.msra.mxu1 %v3473_v3 }
 0x4e3   : > { %v3551_v27 = vpop.eup %3550  ;;  %3213 = vmatprep.subr.bf16.mxu1 %v3999_v0 }
 0x4e4   : > { %v1164_v28 = vsel %vm883_vm2, %v3551_v27, 0.0  ;;  %v3553_v29 = vpop.eup %3552 }
 0x4e5   : > { %1165 = vadd.xlane.f32.xlu1 %v1164_v28  ;;  %v1299_v32 = vsel %vm883_vm2, %v3553_v29, 0.0 }
 0x4e6   : > { %3214 = vmatpush3.bf16.msra.mxu1 %v3474_v8 }
 0x4e7   : > { %v3555_v30 = vpop.eup %3554  ;;  %3215 = vmatprep.subr.bf16.mxu1 %v3999_v0 }
 0x4e8   : > { %v3557_v31 = vpop.eup %3556  ;;  %v1167_v33 = vsel %vm883_vm2, %v3555_v30, 0.0 }
 0x4e9   : > { %v3559_v34 = vpop.eup %3558  ;;  %1300 = vadd.xlane.f32.xlu1 %v1299_v32  ;;  %1168 = vadd.xlane.f32.xlu0 %v1167_v33  ;;  %v1029_v35 = vsel %vm883_vm2, %v3557_v31, 0.0  ;;  %v773_v32 = vld [vmem:[%s4465_s27] sm:$0xff] }
 0x4ea   : > { %v1032_v36 = vsel %vm883_vm2, %v3559_v34, 0.0  ;;  %3216 = vmatpush3.bf16.msra.mxu1 %v3475_v11 }
 0x4eb   : > { %v3561_v37 = vpop.eup %3560  ;;  %3217 = vmatprep.subr.bf16.mxu1 %v3999_v0 }
 0x4ec   : > { %v1302_v38 = vsel %vm883_vm2, %v3561_v37, 0.0 }
 0x4ed   : > { %1030 = vadd.xlane.f32.xlu1 %v1029_v35  ;;  %1033 = vadd.xlane.f32.xlu0 %v1032_v36  ;;  %v774_v36 = vld [vmem:[%s4465_s27 + $0x8] sm:$0xff] }
 0x4ee   : > { %3218 = vmatpush3.bf16.msra.mxu1 %v3476_v14 }
 0x4ef   : > { %3243 = vmatprep.subr.bf16.mxu1 %v3999_v0 }
 0x4f1   : > { %1303 = vadd.xlane.f32.xlu0 %v1302_v38 }
 0x4fe   : > { %1040 = vrot.lane.b32.xlu1 %v4538_v25, %s4001_s2 }
 0x502   : > { %1310 = vrot.lane.b32.xlu1 %v4538_v25, %s4003_s26 }
 0x507   : > { %1175 = vrot.lane.b32.xlu0 %v4538_v25, %s4002_s14 }
 0x572   : > { %v1166_v39 = vpop.xlane.xlu1 %1165 }
 0x576   : > { %v1301_v40 = vpop.xlane.xlu1 %1300  ;;  %v1169_v41 = vpop.xlane.xlu0 %1168 }
 0x57a   : > { %v1031_v42 = vpop.xlane.xlu1 %1030  ;;  %v1034_v43 = vpop.xlane.xlu0 %1033 }
 0x57b   : > { %3562 = vrcp.f32 %v1031_v42 }
 0x57c   : > { %3564 = vrcp.f32 %v1034_v43 }
 0x57d   : > { %3566 = vrcp.f32 %v1169_v41 }
 0x57e   : > { %v1041_v44 = vpop.permute.xlu1 %1040  ;;  %3568 = vrcp.f32 %v1166_v39  ;;  %v1304_v46 = vpop.xlane.xlu0 %1303 }
 0x57f   : > { %3170 = vmatpush3.bf16.msra.mxu0 %v1041_v44  ;;  %3570 = vrcp.f32 %v1304_v46 }
 0x580   : > { %3183 = vmatprep.subr.bf16.mxu0 %v3999_v0  ;;  %3572 = vrcp.f32 %v1301_v40 }
 0x582   : > { %v1176_v25 = vpop.permute.xlu0 %1175  ;;  %v1311_v55 = vpop.permute.xlu1 %1310 }
 0x585   : > { %v3563_v45 = vpop.eup %3562 }
 0x586   : > { %v3565_v47 = vpop.eup %3564  ;;  %v1037_v48 = vmul.f32 %v3563_v45, %v3557_v31 }
 0x587   : > { %v1038_v49 = vmul.f32 %v3565_v47, %v3559_v34  ;;  %v3567_v51 = vpop.eup %3566 }
 0x588   : > { %v3569_v52 = vpop.eup %3568  ;;  %v1173_v53 = vmul.f32 %v3567_v51, %v3555_v30  ;;  %v4622_v30 = vld [vmem:[#allocation14] sm:$0xff]  ;;  %v3479_v51 = vld [vmem:[%s5057_s10 + $0x10] sm:$0xff]  }
 0x589   : > { %v1039_v50 = vpack.c.bf16 %v1038_v49, %v1037_v48  ;;  %v1172_v54 = vmul.f32 %v3569_v52, %v3551_v27  ;;  %v3571_v57 = vpop.eup %3570  ;;  %v1381_v27 = vlaneseq  ;;  %v3480_v52 = vld [vmem:[%s5057_s10 + $0x18] sm:$0xff]  }
 0x58a   : > { %v3573_v58 = vpop.eup %3572  ;;  %v1308_v59 = vmul.f32 %v3571_v57, %v3561_v37 }
 0x58b   : > { %3172 = vmatmul.mubr.msk.bf16.vlgmr.msra.gmra.mrb[12].mxu0 %vm883_vm2, %v1039_v50  ;;  %v1174_v56 = vpack.c.bf16 %v1173_v53, %v1172_v54  ;;  %v1307_v60 = vmul.f32 %v3573_v58, %v3553_v29  ;;  %v4619_v28 = vshrl.u32 %v1381_v27, 7  ;;  %v3478_v50 = vld [vmem:[%s5057_s10 + $0x8] sm:$0xff]   ;;  %v3481_v53 = vld [vmem:[%s5057_s10 + $0x20] sm:$0xff]  }
 0x58c   : > { %3184 = vmatpush3.bf16.msra.mxu0 %v1176_v25  ;;  %3185 = vmatprep.mubr.msk.bf16.mxu0 %vm4000_vm0, %v3999_v0  ;;  %v3477_v25 = vld [vmem:[%s5057_s10] sm:$0xff]   ;;  %v3482_v54 = vld [vmem:[%s5057_s10 + $0x28] sm:$0xff]  }
 0x58d   : > { %3197 = vmatprep.subr.bf16.mxu0 %v3999_v0  ;;  %v1309_v61 = vpack.c.bf16 %v1308_v59, %v1307_v60  ;;  %v1383_v29 = vsub.s32 5, %v4619_v28  ;;  %v4668_v11 = vsub.s32 0, %v4619_v28 }
 0x58f   : > { %v1384_v31 = vrot.slane %v4622_v30, %v1383_v29 }
 0x593   : > { %3186 = vmatmul.mubr.msk.bf16.vlgmr.msra.gmra.mrb[16].mxu0 %vm883_vm2, %v1174_v56  ;;  %v3484_v56 = vld [vmem:[%s5057_s10 + $0x38] sm:$0xff]  }
 0x594   : > { %3198 = vmatpush3.bf16.msra.mxu0 %v1311_v55  ;;  %3199 = vmatprep.mubr.msk.bf16.mxu0 %vm4000_vm0, %v3999_v0  ;;  %v3483_v55 = vld [vmem:[%s5057_s10 + $0x30] sm:$0xff]  }
 0x595   : > { %3223 = vmatprep.subr.bf16.mxu0 %v3999_v0 }
 0x59b   : > { %3200 = vmatmul.mubr.msk.bf16.vlgmr.msra.gmra.mrb[20].mxu0 %vm883_vm2, %v1309_v61 }
 0x59c   : > { %3239 = vmatprep.mubr.msk.bf16.mxu0 %vm4000_vm0, %v3999_v0  ;;  %3224 = vmatpush3.bf16.msra.mxu0 %v3477_v25 }
 0x59d   : > { %3225 = vmatprep.subr.bf16.mxu0 %v3999_v0 }
 0x5a0   : > { %3226 = vmatpush3.bf16.msra.mxu0 %v3478_v50 }
 0x5a1   : > { %3227 = vmatprep.subr.bf16.mxu0 %v3999_v0 }
 0x5a4   : > { %3228 = vmatpush3.bf16.msra.mxu0 %v3479_v51 }
 0x5a5   : > { %3229 = vmatprep.subr.bf16.mxu0 %v3999_v0 }
 0x5a8   : > { %3230 = vmatpush3.bf16.msra.mxu0 %v3480_v52 }
 0x5a9   : > { %3231 = vmatprep.subr.bf16.mxu0 %v3999_v0 }
 0x5ac   : > { %3232 = vmatpush3.bf16.msra.mxu0 %v3481_v53 }
 0x5ad   : > { %3233 = vmatprep.subr.bf16.mxu0 %v3999_v0 }
 0x5b0   : > { %3234 = vmatpush3.bf16.msra.mxu0 %v3482_v54 }
 0x5b1   : > { %3235 = vmatprep.subr.bf16.mxu0 %v3999_v0 }
 0x5b4   : > { %3236 = vmatpush3.bf16.msra.mxu0 %v3483_v55 }
 0x5b5   : > { %3237 = vmatprep.subr.bf16.mxu0 %v3999_v0 }
 0x5b8   : > { %3238 = vmatpush3.bf16.msra.mxu0 %v3484_v56 }
 0x5b9   : > { %3251 = vmatprep.subr.bf16.mxu0 %v3999_v0 }
 0x65e   : > { %v1080_v4 = vpop.f32.mrb[12].mxu0 }
 0x65f   : > { %v3173_v7 = vpop.f32.mrb[13].mxu0 }
 0x660   : > { %v1083_v9 = vpop.f32.mrb[14].mxu0 }
 0x661   : > { %v1087_v5 = vpack.c.bf16 %v1083_v9, %v1080_v4  ;;  %v3174_v10 = vpop.f32.mrb[15].mxu0 }
 0x663   : > { %1089 = vrot.lane.b32.xlu1 %v1087_v5, %s4003_s26 }
 0x666   : > { %v1215_v12 = vpop.f32.mrb[16].mxu0 }
 0x667   : > { %v3187_v13 = vpop.f32.mrb[17].mxu0 }
 0x668   : > { %v1218_v15 = vpop.f32.mrb[18].mxu0  ;;  %v1521_v13 = vsub.s32 1, %v4619_v28 }
 0x669   : > { %v1222_v16 = vpack.c.bf16 %v1218_v15, %v1215_v12  ;;  %v3188_v17 = vpop.f32.mrb[19].mxu0  ;;  %v1496_v12 = vrot.slane %v4622_v30, %v4668_v11 }
 0x66b   : > { %1224 = vrot.lane.b32.xlu1 %v1222_v16, %s4002_s14 }
 0x66e   : > { %v1350_v18 = vpop.f32.mrb[20].mxu0 }
 0x66f   : > { %v3201_v19 = vpop.f32.mrb[21].mxu0 }
 0x670   : > { %v1353_v20 = vpop.f32.mrb[22].mxu0 }
 0x671   : > { %v1357_v6 = vpack.c.bf16 %v1353_v20, %v1350_v18  ;;  %v3202_v21 = vpop.f32.mrb[23].mxu0  ;;  %v1522_v18 = vrot.slane %v4622_v30, %v1521_v13 }
 0x673   : > { %1359 = vrot.lane.b32.xlu0 %v1357_v6, %s4001_s2 }
 0x6d5   : > { %v1090_v22 = vpop.permute.xlu1 %1089 }
 0x6d6   : > { %1093 = vst.msk [vmem:[#allocation2] sm:$0xff] %vm1092_vm3, %v1090_v22 }
 0x6dd   : > { %v1225_v23 = vpop.permute.xlu1 %1224 }
 0x6de   : > { %1228 = vst.msk [vmem:[#allocation2] sm:$0xff] %vm1227_vm4, %v1225_v23  ;;  %v3485_v23 = vld [vmem:[%s4521_s7] sm:$0xff]  }
 0x6e5   : > { %v1360_v24 = vpop.permute.xlu0 %1359 }
 0x6e6   : > { %1363 = vst.msk [vmem:[#allocation2] sm:$0xff] %vm1362_vm5, %v1360_v24  ;;  %v3486_v24 = vld [vmem:[%s4521_s7 + $0x8] sm:$0xff]  }
 0x6ed   : > { %v1364_v26 = vld [vmem:[#allocation2] sm:$0xff] }
 0x6ee   : > { %3220 = vmatmul.mubr.bf16.vlgmr.msra.gmra.mrb[8].mxu1 %v1364_v26  ;;  %v1544_v26 = vsub.s32 4, %v4619_v28 }
 0x6ef   : > { %3247 = vmatprep.mubr.msk.bf16.mxu1 %vm4000_vm0, %v3999_v0  ;;  %3244 = vmatpush3.bf16.msra.mxu1 %v3485_v23 }
 0x6f0   : > { %3245 = vmatprep.subr.bf16.mxu1 %v3999_v0  ;;  %v1545_v27 = vrot.slane %v4622_v30, %v1544_v26 }
 0x6f3   : > { %3246 = vmatpush3.bf16.msra.mxu1 %v3486_v24 }
 0x6f4   : > { %3257 = vmatprep.subr.bf16.mxu1 %v3999_v0 }
 0x7c1   : > { %v1467_v33 = vpop.f32.mrb[8].mxu1 }
 0x7c2   : > { %v1468_v34 = vadd.f32 %v1467_v33, %v1384_v31  ;;  %v3221_v35 = vpop.f32.mrb[9].mxu1 }
 0x7c3   : > { %v1470_v37 = vpop.f32.mrb[10].mxu1 }
 0x7c4   : > { %v4627_v38 = vadd.f32 %v1468_v34, %v773_v32  ;;  %v1471_v39 = vadd.f32 %v1470_v37, %v1384_v31  ;;  %v3222_v40 = vpop.f32.mrb[11].mxu1  ;;  %v3487_v37 = vld [vmem:[%s4521_s7 + $0x10] sm:$0xff]  }
 0x7c5   : > { %v3489_v40 = vld [vmem:[%s4521_s7 + $0x20] sm:$0xff]  }
 0x7c6   : > { %v4629_v41 = vadd.f32 %v1471_v39, %v774_v36  ;;  %1476 = vadd.xlane.f32.xlu1 %v4627_v38  ;;  %v3488_v39 = vld [vmem:[%s4521_s7 + $0x18] sm:$0xff]  }
 0x7c8   : > { %1478 = vadd.xlane.f32.xlu0 %v4629_v41 }
 0x853   : > { %v1477_v42 = vpop.xlane.xlu1 %1476 }
 0x854   : > { %v1481_v43 = vmul.f32 0.0078125, %v1477_v42 }
 0x855   : > { %v1479_v44 = vpop.xlane.xlu0 %1478 }
 0x856   : > { %v1483_v45 = vsub.f32 %v4627_v38, %v1481_v43  ;;  %v1482_v46 = vmul.f32 0.0078125, %v1479_v44  ;;  %v3490_v43 = vld [vmem:[%s4521_s7 + $0x28] sm:$0xff]   ;;  %v3491_v44 = vld [vmem:[%s4521_s7 + $0x30] sm:$0xff]  }
 0x858   : > { %v1484_v47 = vsub.f32 %v4629_v41, %v1482_v46  ;;  %v1485_v48 = vmul.f32 %v1483_v45, %v1483_v45  ;;  %v1497_v15 = vmul.f32 %v1496_v12, %v1483_v45  ;;  %v3492_v46 = vld [vmem:[%s4521_s7 + $0x38] sm:$0xff]   ;;  %s5058_s7 = sld [smem:[#allocation44_spill]] }
 0x85a   : > { %1487 = vadd.xlane.f32.xlu0 %v1485_v48  ;;  %v1486_v49 = vmul.f32 %v1484_v47, %v1484_v47  ;;  %v1498_v16 = vmul.f32 %v1496_v12, %v1484_v47  ;;  %v817_v48 = vld [vmem:[#allocation12] sm:$0x1] }
 0x85e   : > { %1489 = vadd.xlane.f32.xlu0 %v1486_v49  ;;  %v818_v49 = vunpack.c.l.bf16 %v817_v48 }
 0x860   : > { %v1639_v25 = vrot.slane %v818_v49, %v4668_v11 }
 0x8e7   : > { %v1488_v57 = vpop.xlane.xlu0 %1487 }
 0x8e8   : > { %v1491_v58 = vmul.f32 0.007874016, %v1488_v57 }
 0x8ea   : > { %3574 = vrsqrt.f32 %v1491_v58  ;;  %vm1501_vm6 = vcmp.eq.f32.partialorder %v1491_v58, inf  ;;  %v1504_v63 = vand.u32 2147483648, %v1491_v58  ;;  %vm1503_vm7 = vcmp.eq.f32.partialorder %v1491_v58, 0.0 }
 0x8eb   : > { %v1490_v59 = vpop.xlane.xlu0 %1489 }
 0x8ec   : > { %v1492_v60 = vmul.f32 0.007874016, %v1490_v59 }
 0x8ee   : > { %3576 = vrsqrt.f32 %v1492_v60  ;;  %vm1508_vm8 = vcmp.eq.f32.partialorder %v1492_v60, inf  ;;  %v1511_v8 = vand.u32 2147483648, %v1492_v60  ;;  %vm1510_vm9 = vcmp.eq.f32.partialorder %v1492_v60, 0.0 }
 0x8f4   : > { %v3575_v61 = vpop.eup %3574 }
 0x8f5   : > { %v1500_v62 = vmul.f32 %v3575_v61, %v1491_v58 }
 0x8f7   : > { %v1502_v1 = vsel %vm1501_vm6, %v1491_v58, %v1500_v62 }
 0x8f8   : > { %v3577_v2 = vpop.eup %3576  ;;  %v1505_v3 = vsel %vm1503_vm7, %v1504_v63, %v1502_v1 }
 0x8f9   : > { %v1513_v4 = vadd.f32 1e-06, %v1505_v3  ;;  %v1507_v7 = vmul.f32 %v3577_v2, %v1492_v60 }
 0x8fb   : > { %3578 = vrcp.f32 %v1513_v4  ;;  %v1509_v9 = vsel %vm1508_vm8, %v1492_v60, %v1507_v7 }
 0x8fc   : > { %v1512_v5 = vsel %vm1510_vm9, %v1511_v8, %v1509_v9 }
 0x8fd   : > { %v1514_v10 = vadd.f32 1e-06, %v1512_v5 }
 0x8ff   : > { %3580 = vrcp.f32 %v1514_v10 }
 0x905   : > { %v3579_v14 = vpop.eup %3578 }
 0x906   : > { %v1516_v17 = vmul.f32 %v3579_v14, %v1497_v15 }
 0x908   : > { %v1523_v6 = vadd.f32 %v1522_v18, %v1516_v17 }
 0x909   : > { %v3581_v19 = vpop.eup %3580 }
 0x90a   : > { %v1518_v20 = vmul.f32 %v3581_v19, %v1498_v16 }
 0x90c   : > { %v1524_v21 = vadd.f32 %v1522_v18, %v1518_v20 }
 0x90e   : > { %v1525_v22 = vpack.c.bf16 %v1524_v21, %v1523_v6 }
 0x910   : > { %3240 = vmatmul.mubr.bf16.vlgmr.msra.gmra.mrb[24].mxu0 %v1525_v22 }
 0x911   : > { %3253 = vmatprep.mubr.msk.bf16.mxu0 %vm4000_vm0, %v3999_v0 }
 0x9e3   : > { %v1628_v29 = vpop.f32.mrb[24].mxu0 }
 0x9e4   : > { %v3241_v31 = vpop.f32.mrb[25].mxu0  ;;  %v1629_v33 = vadd.f32 %v1628_v29, %v1545_v27 }
 0x9e5   : > { %v1631_v32 = vpop.f32.mrb[26].mxu0 }
 0x9e6   : > { %v1632_v34 = vadd.f32 %v1631_v32, %v1545_v27  ;;  %v3242_v35 = vpop.f32.mrb[27].mxu0 }
 0x9e8   : > { %v1635_v36 = vpack.c.bf16 %v1632_v34, %v1629_v33  ;;  %v3493_v34 = vld [vmem:[%s666_s17] sm:$0xff]   ;;  %s5063_s17 = smov %s5062_s21 }
 0x9e9   : > { %3252 = vmatpush3.bf16.msra.mxu0 %v3493_v34 }
 0x9ea   : > { %1906 = vrot.lane.b32.xlu0 %v1635_v36, %s4002_s14  ;;  %1772 = vrot.lane.b32.xlu1 %v1635_v36, %s4001_s2 }
 0x9eb   : > { %3248 = vmatmul.mubr.msk.bf16.vlgmr.msra.gmra.mrb[12].mxu1 %vm838_vm1, %v1635_v36  ;;  %3265 = vmatprep.subr.bf16.mxu0 %v3999_v0 }
 0x9ec   : > { %3258 = vmatpush3.bf16.msra.mxu1 %v3487_v37  ;;  %3261 = vmatprep.mubr.msk.bf16.mxu1 %vm4000_vm0, %v3999_v0 }
 0x9ed   : > { %3259 = vmatprep.subr.bf16.mxu1 %v3999_v0 }
 0x9ee   : > { %2040 = vrot.lane.b32.xlu1 %v1635_v36, %s4003_s26 }
 0x9f0   : > { %3260 = vmatpush3.bf16.msra.mxu1 %v3488_v39 }
 0x9f1   : > { %3271 = vmatprep.subr.bf16.mxu1 %v3999_v0 }
 0xa5c   : > { %v1773_v42 = vpop.permute.xlu1 %1772  ;;  %v1907_v45 = vpop.permute.xlu0 %1906 }
 0xa5d   : > { %3262 = vmatmul.mubr.msk.bf16.vlgmr.msra.gmra.mrb[16].mxu1 %vm838_vm1, %v1773_v42 }
 0xa5e   : > { %3272 = vmatpush3.bf16.msra.mxu1 %v3489_v40  ;;  %3275 = vmatprep.mubr.msk.bf16.mxu1 %vm4000_vm0, %v3999_v0 }
 0xa5f   : > { %3273 = vmatprep.subr.bf16.mxu1 %v3999_v0 }
 0xa60   : > { %v2041_v47 = vpop.permute.xlu1 %2040 }
 0xa62   : > { %3274 = vmatpush3.bf16.msra.mxu1 %v3490_v43 }
 0xa63   : > { %3285 = vmatprep.subr.bf16.mxu1 %v3999_v0 }
 0xa65   : > { %3276 = vmatmul.mubr.msk.bf16.vlgmr.msra.gmra.mrb[20].mxu1 %vm838_vm1, %v1907_v45 }
 0xa66   : > { %3286 = vmatpush3.bf16.msra.mxu1 %v3491_v44  ;;  %3289 = vmatprep.mubr.msk.bf16.mxu1 %vm4000_vm0, %v3999_v0 }
 0xa67   : > { %3287 = vmatprep.subr.bf16.mxu1 %v3999_v0 }
 0xa6a   : > { %3288 = vmatpush3.bf16.msra.mxu1 %v3492_v46 }
 0xa6b   : > { %3299 = vmatprep.subr.bf16.mxu1 %v3999_v0 }
 0xa6d   : > { %3290 = vmatmul.mubr.msk.bf16.vlgmr.msra.gmra.mrb[24].mxu1 %vm838_vm1, %v2041_v47 }
 0xa6e   : > { %3315 = vmatprep.mubr.msk.bf16.mxu1 %vm4000_vm0, %v3999_v0 }
 0xabe   : > { %v1689_v50 = vpop.f32.mrb[12].mxu1 }
 0xabf   : > { %v1690_v51 = vadd.f32 %v1689_v50, %v1639_v25  ;;  %v3249_v52 = vpop.f32.mrb[13].mxu1 }
 0xac0   : > { %v1692_v53 = vpop.f32.mrb[14].mxu1 }
 0xac1   : > { %v1693_v54 = vadd.f32 %v1692_v53, %v1639_v25  ;;  %v3250_v55 = vpop.f32.mrb[15].mxu1  ;;  %v1696_v56 = vsel %vm883_vm2, %v1690_v51, -inf }
 0xac2   : > { %1697 = vmax.xlane.f32.xlu1 %v1696_v56 }
 0xac3   : > { %v1699_v57 = vsel %vm883_vm2, %v1693_v54, -inf }
 0xac4   : > { %1700 = vmax.xlane.f32.xlu0 %v1699_v57 }
 0xb30   : > { %v1823_v58 = vpop.f32.mrb[16].mxu1 }
 0xb31   : > { %v1824_v59 = vadd.f32 %v1823_v58, %v1639_v25  ;;  %v3263_v60 = vpop.f32.mrb[17].mxu1 }
 0xb32   : > { %v1826_v61 = vpop.f32.mrb[18].mxu1 }
 0xb33   : > { %v1827_v62 = vadd.f32 %v1826_v61, %v1639_v25  ;;  %v3264_v63 = vpop.f32.mrb[19].mxu1  ;;  %v1830_v1 = vsel %vm883_vm2, %v1824_v59, -inf }
 0xb34   : > { %1831 = vmax.xlane.f32.xlu0 %v1830_v1 }
 0xb35   : > { %v1833_v2 = vsel %vm883_vm2, %v1827_v62, -inf }
 0xb36   : > { %1834 = vmax.xlane.f32.xlu1 %v1833_v2 }
 0xb38   : > { %v1957_v3 = vpop.f32.mrb[20].mxu1 }
 0xb39   : > { %v1958_v4 = vadd.f32 %v1957_v3, %v1639_v25  ;;  %v3277_v7 = vpop.f32.mrb[21].mxu1 }
 0xb3a   : > { %v1960_v8 = vpop.f32.mrb[22].mxu1 }
 0xb3b   : > { %v1961_v9 = vadd.f32 %v1960_v8, %v1639_v25  ;;  %v3278_v5 = vpop.f32.mrb[23].mxu1  ;;  %v1964_v10 = vsel %vm883_vm2, %v1958_v4, -inf }
 0xb3c   : > { %1965 = vmax.xlane.f32.xlu0 %v1964_v10 }
 0xb3d   : > { %v1967_v12 = vsel %vm883_vm2, %v1961_v9, -inf }
 0xb3e   : > { %1968 = vmax.xlane.f32.xlu1 %v1967_v12 }
 0xb40   : > { %v2091_v14 = vpop.f32.mrb[24].mxu1 }
 0xb41   : > { %v2092_v15 = vadd.f32 %v2091_v14, %v1639_v25  ;;  %v3291_v16 = vpop.f32.mrb[25].mxu1 }
 0xb42   : > { %v2094_v17 = vpop.f32.mrb[26].mxu1 }
 0xb43   : > { %v4718_v18 = vadd.f32 %v2094_v17, %v1639_v25  ;;  %v3292_v19 = vpop.f32.mrb[27].mxu1  ;;  %v2098_v20 = vsel %vm883_vm2, %v2092_v15, -inf }
 0xb44   : > { %2099 = vmax.xlane.f32.xlu0 %v2098_v20 }
 0xb45   : > { %v2101_v6 = vsel %vm883_vm2, %v4718_v18, -inf }
 0xb46   : > { %2102 = vmax.xlane.f32.xlu1 %v2101_v6 }
 0xb4f   : > { %v1698_v21 = vpop.xlane.xlu1 %1697 }
 0xb50   : > { %v1702_v22 = vsub.f32 %v1690_v51, %v1698_v21 }
 0xb51   : > { %v1701_v23 = vpop.xlane.xlu0 %1700 }
 0xb52   : > { %v1704_v24 = vmul.f32 1.442695, %v1702_v22  ;;  %v1703_v26 = vsub.f32 %v1693_v54, %v1701_v23 }
 0xb54   : > { %3582 = vpow2.f32 %v1704_v24  ;;  %v1706_v27 = vmul.f32 1.442695, %v1703_v26 }
 0xb56   : > { %3584 = vpow2.f32 %v1706_v27 }
 0xb5e   : > { %v3583_v29 = vpop.eup %3582 }
 0xb5f   : > { %v1708_v31 = vsel %vm883_vm2, %v3583_v29, 0.0 }
 0xb60   : > { %v3585_v32 = vpop.eup %3584  ;;  %1709 = vadd.xlane.f32.xlu0 %v1708_v31 }
 0xb61   : > { %v1711_v33 = vsel %vm883_vm2, %v3585_v32, 0.0 }
 0xb62   : > { %1712 = vadd.xlane.f32.xlu1 %v1711_v33 }
 0xbc1   : > { %v1832_v35 = vpop.xlane.xlu0 %1831 }
 0xbc2   : > { %v1836_v36 = vsub.f32 %v1824_v59, %v1832_v35 }
 0xbc3   : > { %v1835_v37 = vpop.xlane.xlu1 %1834 }
 0xbc4   : > { %v1838_v39 = vmul.f32 1.442695, %v1836_v36  ;;  %v1837_v40 = vsub.f32 %v1827_v62, %v1835_v37 }
 0xbc6   : > { %3586 = vpow2.f32 %v1838_v39  ;;  %v1840_v42 = vmul.f32 1.442695, %v1837_v40 }
 0xbc8   : > { %3588 = vpow2.f32 %v1840_v42 }
 0xbc9   : > { %v1966_v43 = vpop.xlane.xlu0 %1965 }
 0xbca   : > { %v1970_v44 = vsub.f32 %v1958_v4, %v1966_v43 }
 0xbcb   : > { %v1969_v45 = vpop.xlane.xlu1 %1968 }
 0xbcc   : > { %v1972_v46 = vmul.f32 1.442695, %v1970_v44  ;;  %v1971_v47 = vsub.f32 %v1961_v9, %v1969_v45 }
 0xbce   : > { %3590 = vpow2.f32 %v1972_v46  ;;  %v1974_v48 = vmul.f32 1.442695, %v1971_v47  ;;  %v3494_v47 = vld [vmem:[#allocation17] sm:$0xff]  }
 0xbcf   : > { %3300 = vmatpush3.bf16.msra.mxu1 %v3494_v47  ;;  %v3523_v47 = vld [vmem:[%s5058_s7 + $0x70] ss:$8 sps:$4 sm:$0xff]  }
 0xbd0   : > { %v3587_v49 = vpop.eup %3586  ;;  %3592 = vpow2.f32 %v1974_v48  ;;  %3301 = vmatprep.subr.bf16.mxu1 %v3999_v0 }
 0xbd1   : > { %v2100_v25 = vpop.xlane.xlu0 %2099  ;;  %v1842_v50 = vsel %vm883_vm2, %v3587_v49, 0.0 }
 0xbd2   : > { %v3589_v51 = vpop.eup %3588  ;;  %v2104_v52 = vsub.f32 %v2092_v15, %v2100_v25  ;;  %1843 = vadd.xlane.f32.xlu0 %v1842_v50  ;;  %v3495_v25 = vld [vmem:[#allocation17 + $0x8] sm:$0xff]  }
 0xbd3   : > { %v1845_v53 = vsel %vm883_vm2, %v3589_v51, 0.0  ;;  %v2103_v61 = vpop.xlane.xlu1 %2102  ;;  %3302 = vmatpush3.bf16.msra.mxu1 %v3495_v25  ;;  %v3528_v25 = vld [vmem:[%s5059_s9 + $0x48] sm:$0xff]  }
 0xbd4   : > { %v2106_v54 = vmul.f32 1.442695, %v2104_v52  ;;  %1846 = vadd.xlane.f32.xlu1 %v1845_v53  ;;  %v2105_v3 = vsub.f32 %v4718_v18, %v2103_v61  ;;  %v3496_v52 = vld [vmem:[#allocation17 + $0x10] sm:$0xff]   ;;  %3303 = vmatprep.subr.bf16.mxu1 %v3999_v0 }
 0xbd5   : > { %v3500_v61 = vld [vmem:[#allocation17 + $0x30] sm:$0xff]  }
 0xbd6   : > { %3594 = vpow2.f32 %v2106_v54  ;;  %v2108_v9 = vmul.f32 1.442695, %v2105_v3 }
 0xbd7   : > { %3304 = vmatpush3.bf16.msra.mxu1 %v3496_v52  ;;  %v3531_v52 = vld [vmem:[%s5059_s9 + $0x10] sm:$0xff]  }
 0xbd8   : > { %v3591_v55 = vpop.eup %3590  ;;  %3305 = vmatprep.subr.bf16.mxu1 %v3999_v0 }
 0xbd9   : > { %v1976_v56 = vsel %vm883_vm2, %v3591_v55, 0.0 }
 0xbda   : > { %v3593_v57 = vpop.eup %3592  ;;  %1977 = vadd.xlane.f32.xlu0 %v1976_v56  ;;  %v3497_v56 = vld [vmem:[#allocation17 + $0x18] sm:$0xff]  }
 0xbdb   : > { %v1979_v58 = vsel %vm883_vm2, %v3593_v57, 0.0  ;;  %3306 = vmatpush3.bf16.msra.mxu1 %v3497_v56  ;;  %v3535_v56 = vld [vmem:[%s5059_s9 + $0x20] sm:$0xff]  }
 0xbdc   : > { %1980 = vadd.xlane.f32.xlu1 %v1979_v58  ;;  %3307 = vmatprep.subr.bf16.mxu1 %v3999_v0 }
 0xbe0   : > { %v3595_v59 = vpop.eup %3594 }
 0xbe1   : > { %v2110_v60 = vsel %vm883_vm2, %v3595_v59, 0.0 }
 0xbe2   : > { %2111 = vadd.xlane.f32.xlu0 %v2110_v60  ;;  %v3499_v60 = vld [vmem:[#allocation17 + $0x28] sm:$0xff]  }
 0xbed   : > { %v1710_v62 = vpop.xlane.xlu0 %1709  ;;  %1987 = vrot.lane.b32.xlu1 %v3493_v34, %s4002_s14 }
 0xbee   : > { %3596 = vrcp.f32 %v1710_v62  ;;  %v3501_v62 = vld [vmem:[#allocation17 + $0x38] sm:$0xff]  }
 0xbef   : > { %v1713_v63 = vpop.xlane.xlu1 %1712 }
 0xbf0   : > { %3598 = vrcp.f32 %v1713_v63 }
 0xbf1   : > { %3600 = vpow2.f32 %v2108_v9 }
 0xbf8   : > { %v3597_v1 = vpop.eup %3596  ;;  %1853 = vrot.lane.b32.xlu0 %v3493_v34, %s4001_s2 }
 0xbf9   : > { %v1716_v4 = vmul.f32 %v3597_v1, %v3583_v29 }
 0xbfa   : > { %v3599_v2 = vpop.eup %3598 }
 0xbfb   : > { %v1717_v7 = vmul.f32 %v3599_v2, %v3585_v32  ;;  %v3601_v5 = vpop.eup %3600 }
 0xbfc   : > { %v2113_v10 = vsel %vm883_vm2, %v3601_v5, 0.0 }
 0xbfd   : > { %v1718_v8 = vpack.c.bf16 %v1717_v7, %v1716_v4 }
 0xbff   : > { %3254 = vmatmul.mubr.msk.bf16.vlgmr.msra.gmra.mrb[28].mxu0 %vm883_vm2, %v1718_v8 }
 0xc00   : > { %3267 = vmatprep.mubr.msk.bf16.mxu0 %vm4000_vm0, %v3999_v0 }
 0xc11   : > { %2114 = vadd.xlane.f32.xlu1 %v2113_v10 }
 0xc22   : > { %2121 = vrot.lane.b32.xlu1 %v3493_v34, %s4003_s26 }
 0xc5f   : > { %v1844_v14 = vpop.xlane.xlu0 %1843 }
 0xc61   : > { %v1847_v12 = vpop.xlane.xlu1 %1846 }
 0xc62   : > { %3602 = vrcp.f32 %v1847_v12 }
 0xc63   : > { %3604 = vrcp.f32 %v1844_v14 }
 0xc67   : > { %v1978_v16 = vpop.xlane.xlu0 %1977 }
 0xc69   : > { %v1981_v15 = vpop.xlane.xlu1 %1980 }
 0xc6a   : > { %3606 = vrcp.f32 %v1981_v15 }
 0xc6b   : > { %3608 = vrcp.f32 %v1978_v16 }
 0xc6c   : > { %v3603_v17 = vpop.eup %3602 }
 0xc6d   : > { %v3605_v19 = vpop.eup %3604  ;;  %v1851_v20 = vmul.f32 %v3603_v17, %v3589_v51  ;;  %v1988_v24 = vpop.permute.xlu1 %1987 }
 0xc6e   : > { %v1850_v6 = vmul.f32 %v3605_v19, %v3587_v49 }
 0xc6f   : > { %v2112_v18 = vpop.xlane.xlu0 %2111 }
 0xc70   : > { %v1852_v22 = vpack.c.bf16 %v1851_v20, %v1850_v6  ;;  %3610 = vrcp.f32 %v2112_v18 }
 0xc73   : > { %v1854_v21 = vpop.permute.xlu0 %1853 }
 0xc74   : > { %3266 = vmatpush3.bf16.msra.mxu0 %v1854_v21  ;;  %v3607_v23 = vpop.eup %3606 }
 0xc75   : > { %3279 = vmatprep.subr.bf16.mxu0 %v3999_v0  ;;  %v3609_v26 = vpop.eup %3608  ;;  %v1985_v27 = vmul.f32 %v3607_v23, %v3593_v57 }
 0xc76   : > { %v1984_v29 = vmul.f32 %v3609_v26, %v3591_v55 }
 0xc77   : > { %3268 = vmatmul.mubr.msk.bf16.vlgmr.msra.gmra.mrb[32].mxu0 %vm883_vm2, %v1852_v22 }
 0xc78   : > { %3280 = vmatpush3.bf16.msra.mxu0 %v1988_v24  ;;  %3281 = vmatprep.mubr.msk.bf16.mxu0 %vm4000_vm0, %v3999_v0  ;;  %v1986_v31 = vpack.c.bf16 %v1985_v27, %v1984_v29  ;;  %v3504_v27 = vld [vmem:[%s5058_s7 + $0x4] ss:$8 sps:$4 sm:$0xff]   ;;  %v3502_v29 = vld [vmem:[%s5058_s7] ss:$8 sps:$4 sm:$0xff]  }
 0xc79   : > { %3293 = vmatprep.subr.bf16.mxu0 %v3999_v0 }
 0xc7a   : > { %v3611_v34 = vpop.eup %3610 }
 0xc7b   : > { %v2118_v36 = vmul.f32 %v3611_v34, %v3595_v59  ;;  %v3498_v59 = vld [vmem:[#allocation17 + $0x20] sm:$0xff]  }
 0xc7c   : > { %3308 = vmatpush3.bf16.msra.mxu1 %v3498_v59  ;;  %v3508_v34 = vld [vmem:[%s5058_s7 + $0x20] ss:$8 sps:$4 sm:$0xff]  }
 0xc7d   : > { %3309 = vmatprep.subr.bf16.mxu1 %v3999_v0 }
 0xc7f   : > { %3282 = vmatmul.mubr.msk.bf16.vlgmr.msra.gmra.mrb[36].mxu0 %vm883_vm2, %v1986_v31  ;;  %v3507_v31 = vld [vmem:[%s5058_s7 + $0x14] ss:$8 sps:$4 sm:$0xff]  }
 0xc80   : > { %3295 = vmatprep.mubr.msk.bf16.mxu0 %vm4000_vm0, %v3999_v0  ;;  %3310 = vmatpush3.bf16.msra.mxu1 %v3499_v60 }
 0xc81   : > { %3311 = vmatprep.subr.bf16.mxu1 %v3999_v0 }
 0xc84   : > { %3312 = vmatpush3.bf16.msra.mxu1 %v3500_v61 }
 0xc85   : > { %3313 = vmatprep.subr.bf16.mxu1 %v3999_v0  ;;  %v2193_v0 = vsub.s32 6, %v4619_v28 }
 0xc87   : > { %v2194_v10 = vrot.slane %v4622_v30, %v2193_v0 }
 0xc88   : > { %3314 = vmatpush3.bf16.msra.mxu1 %v3501_v62 }
 0xc9e   : > { %v2115_v32 = vpop.xlane.xlu1 %2114 }
 0xc9f   : > { %3612 = vrcp.f32 %v2115_v32  ;;  %v3505_v32 = vld [vmem:[%s5058_s7 + $0x10] ss:$8 sps:$4 sm:$0xff]  }
 0xca2   : > { %v2122_v33 = vpop.permute.xlu1 %2121 }
 0xca3   : > { %3294 = vmatpush3.bf16.msra.mxu0 %v2122_v33  ;;  %v3510_v33 = vld [vmem:[%s5058_s7 + $0x24] ss:$8 sps:$4 sm:$0xff]  }
 0xca4   : > { %2442 = vmatprep.subr.bf16.mxu0 %v3504_v27 }
 0xca9   : > { %v3613_v35 = vpop.eup %3612 }
 0xcaa   : > { %v2119_v37 = vmul.f32 %v3613_v35, %v3601_v5  ;;  %v3513_v35 = vld [vmem:[%s5058_s7 + $0x34] ss:$8 sps:$4 sm:$0xff]  }
 0xcac   : > { %v2120_v39 = vpack.c.bf16 %v2119_v37, %v2118_v36  ;;  %v3511_v36 = vld [vmem:[%s5058_s7 + $0x30] ss:$8 sps:$4 sm:$0xff]   ;;  %v3514_v37 = vld [vmem:[%s5058_s7 + $0x40] ss:$8 sps:$4 sm:$0xff]  }
 0xcae   : > { %3296 = vmatmul.mubr.msk.bf16.vlgmr.msra.gmra.mrb[40].mxu0 %vm883_vm2, %v2120_v39  ;;  %v3516_v39 = vld [vmem:[%s5058_s7 + $0x44] ss:$8 sps:$4 sm:$0xff]  }
 0xcaf   : > { %2443 = vmatpush1.bf16.msra.mxu0 %v3502_v29  ;;  %v3537_v29 = vld [vmem:[%s5059_s9 + $0x28] sm:$0xff]  }
 0xcb0   : > { %2444 = vmatprep.subr.bf16.mxu0 %v3507_v31  ;;  %v3540_v31 = vld [vmem:[%s5059_s9 + $0x78] sm:$0xff]  }
 0xcb3   : > { %2445 = vmatpush1.bf16.msra.mxu0 %v3505_v32  ;;  %v3541_v32 = vld [vmem:[%s5059_s9 + $0x38] sm:$0xff]  }
 0xcb4   : > { %2446 = vmatprep.subr.bf16.mxu0 %v3510_v33  ;;  %v820_v33 = vld [vmem:[%s5060_s20] sm:$0x3] }
 0xcb7   : > { %2447 = vmatpush1.bf16.msra.mxu0 %v3508_v34  ;;  %v2355_v34 = vrot.slane %v820_v33, %v4668_v11  ;;  %v2664_v11 = vsub.s32 7, %v4619_v28 }
 0xcb8   : > { %2448 = vmatprep.subr.bf16.mxu0 %v3513_v35  ;;  %v2359_v35 = vrot.slane %v820_v33, %v1521_v13 }
 0xcbb   : > { %2449 = vmatpush1.bf16.msra.mxu0 %v3511_v36 }
 0xcbc   : > { %2450 = vmatprep.subr.bf16.mxu0 %v3516_v39 }
 0xcbf   : > { %2451 = vmatpush1.bf16.msra.mxu0 %v3514_v37 }
 0xcd2   : > { %v1762_v40 = vpop.f32.mrb[28].mxu0 }
 0xcd3   : > { %v3255_v42 = vpop.f32.mrb[29].mxu0 }
 0xcd4   : > { %v1765_v43 = vpop.f32.mrb[30].mxu0  ;;  %v3517_v42 = vld [vmem:[%s5058_s7 + $0x50] ss:$8 sps:$4 sm:$0xff]  }
 0xcd5   : > { %v1769_v44 = vpack.c.bf16 %v1765_v43, %v1762_v40  ;;  %v3256_v45 = vpop.f32.mrb[31].mxu0  ;;  %v3519_v40 = vld [vmem:[%s5058_s7 + $0x54] ss:$8 sps:$4 sm:$0xff]   ;;  %v4004_v43 = vmov 0  }
 0xcd6   : > { %2474 = vmatprep.mubr.bf16.mxu0 %v4004_v43  ;;  %2452 = vmatprep.subr.bf16.mxu0 %v3519_v40  ;;  %v3520_v45 = vld [vmem:[%s5058_s7 + $0x60] ss:$8 sps:$4 sm:$0xff]  }
 0xcd7   : > { %1770 = vst.msk [vmem:[#allocation2] sm:$0xff] %vm838_vm1, %v1769_v44  ;;  %v3522_v44 = vld [vmem:[%s5058_s7 + $0x64] ss:$8 sps:$4 sm:$0xff]   ;;  %2453 = vmatpush1.bf16.msra.mxu0 %v3517_v42 }
 0xcd8   : > { %2454 = vmatprep.subr.bf16.mxu0 %v3522_v44 }
 0xcdb   : > { %2455 = vmatpush1.bf16.msra.mxu0 %v3520_v45 }
 0xd4a   : > { %v1893_v46 = vpop.f32.mrb[32].mxu0 }
 0xd4b   : > { %v3269_v48 = vpop.f32.mrb[33].mxu0 }
 0xd4c   : > { %v1896_v49 = vpop.f32.mrb[34].mxu0  ;;  %v3526_v48 = vld [vmem:[%s5059_s9 + $0x40] sm:$0xff]  }
 0xd4d   : > { %v1900_v50 = vpack.c.bf16 %v1896_v49, %v1893_v46  ;;  %v3270_v51 = vpop.f32.mrb[35].mxu0  ;;  %v3525_v46 = vld [vmem:[%s5058_s7 + $0x74] ss:$8 sps:$4 sm:$0xff]   ;;  %v3527_v49 = vld [vmem:[%s5059_s9] sm:$0xff]   ;;  %3125 = vmatprep.subr.bf16.mxu1 %v3526_v48 }
 0xd4e   : > { %2456 = vmatprep.subr.bf16.mxu0 %v3525_v46  ;;  %v3530_v51 = vld [vmem:[%s5059_s9 + $0x50] sm:$0xff]  }
 0xd4f   : > { %1902 = vrot.lane.b32.xlu1 %v1900_v50, %s4003_s26  ;;  %2457 = vmatpush1.bf16.msra.mxu0 %v3523_v47  ;;  %v3529_v50 = vld [vmem:[%s5059_s9 + $0x8] sm:$0xff]   ;;  %s3886_s26 = sshll.u32 %s4005_s29, 4  ;;  %s3887_s26 = int_to_ptr.vmem [resolvable:$false] %s3886_s26 }
 0xd50   : > { %s3888_s30 = scalar_lea.vmem %s3887_s26, 512  ;;  %p3889_p6 = scmp.lt.s32.totalorder %s4898_s13, %s3887_s26 }
 0xd52   : > { %v2027_v53 = vpop.f32.mrb[36].mxu0 }
 0xd53   : > { %v3283_v54 = vpop.f32.mrb[37].mxu0 }
 0xd54   : > { %v2030_v55 = vpop.f32.mrb[38].mxu0  ;;  %v3533_v54 = vld [vmem:[%s5059_s9 + $0x18] sm:$0xff]  }
 0xd55   : > { %v2034_v57 = vpack.c.bf16 %v2030_v55, %v2027_v53  ;;  %v3284_v58 = vpop.f32.mrb[39].mxu0  ;;  %v3532_v53 = vld [vmem:[%s5059_s9 + $0x58] sm:$0xff]   ;;  %v3534_v55 = vld [vmem:[%s5059_s9 + $0x60] sm:$0xff]  }
 0xd57   : > { %2036 = vrot.lane.b32.xlu0 %v2034_v57, %s4002_s14  ;;  %v3536_v57 = vld [vmem:[%s5059_s9 + $0x68] sm:$0xff]   ;;  %s3882_s14 = scalar_lea.vmem %s4898_s13, 256 }
 0xd58   : > { %p3883_p9 = scmp.ne.s32.totalorder %s4898_s13, %s3882_s14  ;;  %p3890_p13 = scmp.lt.s32.totalorder %s3888_s30, %s3882_s14 }
 0xd5a   : > { %p3884_p0 = pnand %p3883_p9, %p5064_p5  ;;  %p3891_p2 = por %p3890_p13, %p3889_p6 }
 0xd5c   : > { %p3885_p8 = pneg %p3884_p0 }
 0xd5e   : > { %p3892_p3 = pnand %p3891_p2, %p3885_p8 }
 0xd81   : > { %v2161_v63 = vpop.f32.mrb[40].mxu0 }
 0xd82   : > { %v3297_v1 = vpop.f32.mrb[41].mxu0 }
 0xd83   : > { %v2164_v2 = vpop.f32.mrb[42].mxu0 }
 0xd84   : > { %v2168_v3 = vpack.c.bf16 %v2164_v2, %v2161_v63  ;;  %v3298_v4 = vpop.f32.mrb[43].mxu0 }
 0xd86   : > { %2170 = vrot.lane.b32.xlu1 %v2168_v3, %s4001_s2  ;;  %s4904_s2 = scalar_lea.hbm %s5062_s21, %s3053_s11 }
 0xdc1   : > { %v1903_v7 = vpop.permute.xlu1 %1902 }
 0xdc2   : > { %1905 = vst.msk [vmem:[#allocation2] sm:$0xff] %vm1092_vm3, %v1903_v7 }
 0xdc9   : > { %v2037_v8 = vpop.permute.xlu0 %2036 }
 0xdca   : > { %2039 = vst.msk [vmem:[#allocation2] sm:$0xff] %vm1227_vm4, %v2037_v8 }
 0xdf8   : > { %v2171_v9 = vpop.permute.xlu1 %2170 }
 0xdf9   : > { %2173 = vst.msk [vmem:[#allocation2] sm:$0xff] %vm1362_vm5, %v2171_v9 }
 0xe00   : > { %v2174_v5 = vld [vmem:[#allocation2] sm:$0xff] }
 0xe01   : > { %3316 = vmatmul.mubr.bf16.vlgmr.msra.gmra.mrb[28].mxu1 %v2174_v5 }
 0xe02   : > { %3126 = vmatpush3.bf16.msra.mxu1 %v3527_v49 }
 0xe03   : > { %3127 = vmatprep.subr.bf16.mxu1 %v3528_v25 }
 0xe06   : > { %3128 = vmatpush3.bf16.msra.mxu1 %v3529_v50 }
 0xe07   : > { %3129 = vmatprep.subr.bf16.mxu1 %v3530_v51 }
 0xe0a   : > { %3130 = vmatpush3.bf16.msra.mxu1 %v3531_v52 }
 0xe0b   : > { %3131 = vmatprep.subr.bf16.mxu1 %v3532_v53  ;;  %v2665_v53 = vrot.slane %v4622_v30, %v2664_v11 }
 0xe0e   : > { %3132 = vmatpush3.bf16.msra.mxu1 %v3533_v54 }
 0xe0f   : > { %3133 = vmatprep.subr.bf16.mxu1 %v3534_v55 }
 0xe12   : > { %3134 = vmatpush3.bf16.msra.mxu1 %v3535_v56 }
 0xe13   : > { %3135 = vmatprep.subr.bf16.mxu1 %v3536_v57 }
 0xe16   : > { %3136 = vmatpush3.bf16.msra.mxu1 %v3537_v29 }
 0xed4   : > { %v2277_v12 = vpop.f32.mrb[28].mxu1 }
 0xed5   : > { %v2278_v14 = vadd.f32 %v2277_v12, %v2194_v10  ;;  %v3317_v15 = vpop.f32.mrb[29].mxu1  ;;  %v2304_v12 = vsub.s32 2, %v4619_v28 }
 0xed6   : > { %v2280_v16 = vpop.f32.mrb[30].mxu1  ;;  %v2330_v15 = vsub.s32 3, %v4619_v28 }
 0xed7   : > { %v4767_v17 = vadd.f32 %v2278_v14, %v4627_v38  ;;  %v2281_v18 = vadd.f32 %v2280_v16, %v2194_v10  ;;  %v3318_v19 = vpop.f32.mrb[31].mxu1  ;;  %v2305_v14 = vrot.slane %v4622_v30, %v2304_v12 }
 0xed9   : > { %v4770_v20 = vadd.f32 %v2281_v18, %v4629_v41  ;;  %2286 = vadd.xlane.f32.xlu0 %v4767_v17 }
 0xedb   : > { %2288 = vadd.xlane.f32.xlu1 %v4770_v20 }
 0xf66   : > { %v2287_v6 = vpop.xlane.xlu0 %2286 }
 0xf67   : > { %v2290_v21 = vmul.f32 0.0078125, %v2287_v6 }
 0xf68   : > { %v2289_v22 = vpop.xlane.xlu1 %2288 }
 0xf69   : > { %v4775_v23 = vsub.f32 %v4767_v17, %v2290_v21  ;;  %v2291_v24 = vmul.f32 0.0078125, %v2289_v22  ;;  %v2331_v21 = vrot.slane %v4622_v30, %v2330_v15 }
 0xf6b   : > { %v4778_v26 = vsub.f32 %v4770_v20, %v2291_v24  ;;  %v2294_v38 = vmul.f32 %v4775_v23, %v4775_v23  ;;  %v2306_v18 = vmul.f32 %v2305_v14, %v4775_v23  ;;  %v3538_v23 = vld [vmem:[%s5059_s9 + $0x70] sm:$0xff]  }
 0xf6c   : > { %3137 = vmatprep.subr.bf16.mxu1 %v3538_v23 }
 0xf6d   : > { %2296 = vadd.xlane.f32.xlu0 %v2294_v38  ;;  %v2295_v41 = vmul.f32 %v4778_v26, %v4778_v26  ;;  %v2307_v19 = vmul.f32 %v2305_v14, %v4778_v26  ;;  %v3539_v26 = vld [vmem:[%s5059_s9 + $0x30] sm:$0xff]  }
 0xf6e   : > { %3138 = vmatpush3.bf16.msra.mxu1 %v3539_v26 }
 0xf6f   : > { %3139 = vmatprep.subr.bf16.mxu1 %v3540_v31 }
 0xf71   : > { %2298 = vadd.xlane.f32.xlu0 %v2295_v41 }
 0xf72   : > { %3140 = vmatpush3.bf16.msra.mxu1 %v3541_v32 }
 0xffa   : > { %v2297_v58 = vpop.xlane.xlu0 %2296 }
 0xffb   : > { %v2300_v59 = vmul.f32 0.007874016, %v2297_v58 }
 0xffd   : > { %3614 = vrsqrt.f32 %v2300_v59  ;;  %vm2310_vm10 = vcmp.eq.f32.partialorder %v2300_v59, inf  ;;  %v2313_v1 = vand.u32 2147483648, %v2300_v59  ;;  %vm2312_vm11 = vcmp.eq.f32.partialorder %v2300_v59, 0.0 }
 0xffe   : > { %v2299_v60 = vpop.xlane.xlu0 %2298 }
 0xfff   : > { %v2301_v61 = vmul.f32 0.007874016, %v2299_v60 }
0x1001   : > { %3616 = vrsqrt.f32 %v2301_v61  ;;  %vm2317_vm12 = vcmp.eq.f32.partialorder %v2301_v61, inf  ;;  %v2320_v9 = vand.u32 2147483648, %v2301_v61  ;;  %vm2319_vm13 = vcmp.eq.f32.partialorder %v2301_v61, 0.0 }
0x1007   : > { %v3615_v62 = vpop.eup %3614 }
0x1008   : > { %v2309_v63 = vmul.f32 %v3615_v62, %v2300_v59 }
0x100a   : > { %v2311_v2 = vsel %vm2310_vm10, %v2300_v59, %v2309_v63 }
0x100b   : > { %v3617_v3 = vpop.eup %3616  ;;  %v2314_v4 = vsel %vm2312_vm11, %v2313_v1, %v2311_v2 }
0x100c   : > { %v2322_v7 = vadd.f32 1e-06, %v2314_v4  ;;  %v2316_v8 = vmul.f32 %v3617_v3, %v2301_v61 }
0x100e   : > { %3618 = vrcp.f32 %v2322_v7  ;;  %v2318_v5 = vsel %vm2317_vm12, %v2301_v61, %v2316_v8 }
0x100f   : > { %v2321_v0 = vsel %vm2319_vm13, %v2320_v9, %v2318_v5 }
0x1010   : > { %v2323_v10 = vadd.f32 1e-06, %v2321_v0 }
0x1012   : > { %3620 = vrcp.f32 %v2323_v10 }
0x1018   : > { %v3619_v16 = vpop.eup %3618 }
0x1019   : > { %v2325_v6 = vmul.f32 %v3619_v16, %v2306_v18 }
0x101b   : > { %v2332_v38 = vadd.f32 %v2331_v21, %v2325_v6 }
0x101c   : > { %v3621_v22 = vpop.eup %3620 }
0x101d   : > { %v2327_v24 = vmul.f32 %v3621_v22, %v2307_v19 }
0x101f   : > { %v2333_v41 = vadd.f32 %v2331_v21, %v2327_v24 }
0x1021   : > { %v2334_v27 = vpack.c.bf16 %v2333_v41, %v2332_v38 }
0x1023   : > { %2475 = vmatmul.mubr.bf16.vlgmr.msra.gmra.mrb[44].mxu0 %v2334_v27 }
0x10f6   : > { %v2476_v36 = vpop.f32.mrb[44].mxu0 }
0x10f7   : > { %v2477_v37 = vadd.f32 %v2476_v36, %v2355_v34  ;;  %v2478_v39 = vpop.f32.mrb[45].mxu0 }
0x10f8   : > { %v2479_v40 = vadd.f32 %v2478_v39, %v2359_v35  ;;  %v2480_v42 = vpop.f32.mrb[46].mxu0 }
0x10f9   : > { %v2481_v43 = vadd.f32 %v2480_v42, %v2355_v34  ;;  %v2482_v44 = vpop.f32.mrb[47].mxu0  ;;  %v2485_v46 = vmax.f32 %v2477_v37, 0.0 }
0x10fa   : > { %v2483_v45 = vadd.f32 %v2482_v44, %v2359_v35  ;;  %v2486_v48 = vmax.f32 %v2479_v40, 0.0 }
0x10fb   : > { %v2487_v47 = vmax.f32 %v2481_v43, 0.0 }
0x10fc   : > { %v2488_v49 = vmax.f32 %v2483_v45, 0.0 }
0x10fd   : > { %v2489_v25 = vpack.c.bf16 %v2487_v47, %v2485_v46 }
0x10fe   : > { %v2490_v50 = vpack.c.bf16 %v2488_v49, %v2486_v48 }
0x1100   : > { %2651 = vmatprep.mubr.bf16.mxu1 %v2490_v50 }
0x1101   : > { %2652 = vmatmul.mubr.bf16.vlgmr.msra.gmra.mrb[32].mxu1 %v2489_v25 }
0x11d4   : > { %v3141_v13 = vpop.f32.mrb[32].mxu1 }
0x11d5   : > { %v3142_v51 = vpop.f32.mrb[33].mxu1 }
0x11d6   : > { %v3143_v52 = vadd.f32 %v3142_v51, %v3141_v13  ;;  %v3144_v54 = vpop.f32.mrb[34].mxu1 }
0x11d7   : > { %v3145_v55 = vpop.f32.mrb[35].mxu1 }
0x11d8   : > { %v2660_v56 = vadd.f32 %v3143_v52, %v4767_v17  ;;  %v3146_v57 = vadd.f32 %v3145_v55, %v3144_v54 }
0x11da   : > { %v2666_v58 = vadd.f32 %v2665_v53, %v2660_v56  ;;  %v2661_v28 = vadd.f32 %v3146_v57, %v4770_v20 }
0x11dc   : > { %2668 = vst [vmem:[%s757_s15] sm:$0xff] %v2666_v58  ;;  %v2667_v30 = vadd.f32 %v2665_v53, %v2661_v28 }
0x11de   : > { %2669 = vst [vmem:[%s757_s15 + $0x8] sm:$0xff] %v2667_v30 }
0x11df   : > { %3895 = shalt.err (!%p3892_p3)
}
0x11e0   : > { %s3896_s18 = scalar_lea.hbm %s4904_s2, 256  ;;  %s3900_s4 = scalar_lea.hbm %s5063_s17, 512 }
0x11e1   : > { %p3897_p1 = scmp.ne.s32.totalorder %s4904_s2, %s3896_s18  ;;  %p3901_p10 = scmp.lt.u32.totalorder %s4904_s2, %s5063_s17 }
0x11e2   : > { %p3902_p12 = scmp.lt.u32.totalorder %s3900_s4, %s3896_s18  ;;  %p3904_p9 = scmp.lt.u32.totalorder %s3896_s18, %s4904_s2 }
0x11e3   : > { %p3898_p11 = pnand %p3897_p1, %p5064_p5 }
0x11e4   : > { %p3903_p7 = por %p3902_p12, %p3901_p10 }
0x11e5   : > { %p3899_p4 = pneg %p3898_p11 }
0x11e6   : > { %p3905_p0 = por %p3904_p9, %p3903_p7 }
0x11e8   : > { %p3906_p8 = pnand %p3905_p0, %p3899_p4 }
0x11ea   : > { %3909 = shalt.err (!%p3906_p8)
}
0x11eb   : > { %s4006_s15 = smov 128   ;;  %s4007_s11 = smov 8  }
0x11ec   : > { %3347 = dma.vmem_to_hbm [thread:$0]  (%p5064_p5), %s4898_s13, 256, %s4904_s2, %s2671_s16, %s4006_s15, %s4006_s15, %s4007_s11  }
0x11ed PF: > { %s5065_s27 = sld [smem:[#allocation26_spill]]  ;;  %s5066_s28 = sld [smem:[#allocation32_spill]] }
0x11ee   : > { %p5068_p13 = scmp.ge.s32.totalorder %s3984_s23, 2 }
0x11f3   : > { %s2701_s21 = sand.u32 1, %s5065_s27   ;;  %p5067_p6 = scmp.ne.s32.totalorder %s5066_s28, 0 }
0x11f4   : > { %s2702_s14 = scalar_lea.sflag [#allocation5], %s2701_s21 }
0x11f5   : > { %p3379_p2 = pnand %p5068_p13, %p5067_p6 }
0x11f7   : > { %3959 = dma.done.wait (!%p3379_p2), %s2702_s14, 256  }
0x11f8   : > { %3961 = vsyncadd (!%p3379_p2), %s2702_s14, 4294967040  ;;  %s39_s23 = sadd.s32 1, %s3984_s23   ;;  %s5069_s18 = sld [smem:[#allocation27_spill]] }
0x11f9   : > { %p36_p3 = scmp.ge.s32.totalorder %s39_s23, 4   ;;  %s5070_s19 = sld [smem:[#allocation28_spill]] }
0x11fa   : > { %s5071_s20 = sld [smem:[#allocation35_spill]]  ;;  %s5072_s6 = sld [smem:[#allocation34_spill]] }
0x11fb   : > { %s5073_s21 = smov %s3980_s22  ;;  %38 = sbr.rel (!%p36_p3) target bundleno = 24 (0x18), region = 189 }
0x1200   : > { %s5074_s22 = smov %s5072_s6 }
0x1202   :  { %2707 = vsyncpa [#allocation4], 1 }
0x1203   :  { %2709 = vsyncpa [#allocation4 + $0x1], 1 }
0x1204   :  { %2710 = vsyncpa [#allocation7], 1 }
0x1205   :  { %2712 = vsyncpa [#allocation7 + $0x1], 1 }
0x1206   :  { %2713 = vsyncpa [#allocation10], 1 }
0x1207   :  { %2715 = vsyncpa [#allocation10 + $0x1], 1 }
0x1208   :  { %2716 = vsyncpa [#allocation13], 1 }
0x1209   :  { %2717 = vsyncpa [#allocation16], 1 }
0x120a   :  { %2718 = vsyncpa [#allocation5], 1 }
0x120b   :  { %2720 = vsyncpa [#allocation5 + $0x1], 1 }

</bundles_post_ra>
